<compile_context>
chip_gen: v7x
topology: tpu7x:2x2x1
jax: 0.10.0
libtpu: 0.0.40
codegen_flags: <defaults>
</compile_context>

<pallas_src>
import functools

import jax
import jax.numpy as jnp
from jax import lax
from jax.experimental import pallas as pl
from jax.experimental.pallas import tpu as pltpu

NDF = 8            # config.STAGE1_D_HDIM (small demo size)
EMB = 32           # config.EMBEDDING_DIM
LRELU_SLOPE = 0.2
BN_EPS = 1e-5
_VMEM_LIMIT = 32 * 1024 * 1024   # explicit scoped-VMEM budget; safe on v5e/v6e/v7x


# ----------------------------------------------------------------------------
# Pallas kernels
# ----------------------------------------------------------------------------
def _conv_act_kernel(w_ref, x_ref, o_ref, *, clamp, slope):
    """(Cout, K) @ (K, rows_tile) with fused input clamp + LeakyReLU.

    Clamp runs in f32 before the in-kernel bf16 cast; the matmul runs on the
    MXU in bf16 with f32 accumulation; the epilogue stays in f32 and only the
    final store casts to the (bf16) output dtype."""
    x = x_ref[...]
    if clamp is not None:
        x = jnp.clip(x.astype(jnp.float32), clamp[0], clamp[1])
    acc = jnp.dot(w_ref[...].astype(jnp.bfloat16), x.astype(jnp.bfloat16),
                  preferred_element_type=jnp.float32)            # (Cout, rows_tile)
    if slope is not None:
        acc = jnp.where(acc >= 0, acc, slope * acc)
    o_ref[...] = acc.astype(o_ref.dtype)


def _conv_bn_act_kernel(w_ref, x_ref, gb_ref, o_ref, *, slope, eps):
    """(Cout, K) @ (K, rows) + training-mode BatchNorm (batch stats over the
    rows/lane axis, two-pass variance) + affine + LeakyReLU, before one store.

    The whole (Cout, rows) accumulator stays resident in VMEM (grid=(1,))."""
    acc = jnp.dot(w_ref[...].astype(jnp.bfloat16), x_ref[...].astype(jnp.bfloat16),
                  preferred_element_type=jnp.float32)            # (Cout, rows)
    mean = jnp.mean(acc, axis=1, keepdims=True)
    cen = acc - mean
    var = jnp.mean(cen * cen, axis=1, keepdims=True)             # biased == PyTorch training mode
    gb = gb_ref[...]                                             # (Cout, 2): [gamma, beta]
    y = cen * lax.rsqrt(var + eps) * gb[:, 0:1] + gb[:, 1:2]
    o_ref[...] = jnp.where(y >= 0, y, slope * y).astype(o_ref.dtype)


def _tail_kernel(w4_ref, x4_ref, gb4_ref, fcw_ref, temb_ref, gbt_ref,
                 wcol_ref, wtxt_ref, sel_ref, o_ref, *, slope, eps, tclamp):
    """Fused tail: conv4+BN+LReLU (image side), clamp+linear+BN+LReLU (text
    side), and the final Cout=1 4x4 valid conv over concat([img, text]).

    The text features are spatially constant, so the final conv splits into
    <img_features, w_img> (per-batch column groups, summed via a 0/1 selector
    matmul) plus <text_features, spatially-summed w_txt>; the concat and the
    (N, 1024) feature slab never leave VMEM."""
    # ---- image side: conv4 + BN + LeakyReLU ---------------------------------
    acc = jnp.dot(w4_ref[...].astype(jnp.bfloat16), x4_ref[...].astype(jnp.bfloat16),
                  preferred_element_type=jnp.float32)            # (8ndf, N*16)
    mean = jnp.mean(acc, axis=1, keepdims=True)
    cen = acc - mean
    var = jnp.mean(cen * cen, axis=1, keepdims=True)
    gb4 = gb4_ref[...]
    y4 = cen * lax.rsqrt(var + eps) * gb4[:, 0:1] + gb4[:, 1:2]
    y4 = jnp.where(y4 >= 0, y4, slope * y4)

    # ---- text side: clamp + linear + BN + LeakyReLU -------------------------
    # (fc bias is zero-init AND exactly cancelled by the batch-stat BN mean
    #  subtraction, so it never enters the compute)
    t = jnp.clip(temb_ref[...], -tclamp, tclamp)                 # f32 clamp first
    tf = jnp.dot(fcw_ref[...].astype(jnp.bfloat16), t.astype(jnp.bfloat16),
                 preferred_element_type=jnp.float32)             # (8ndf, N)
    tmean = jnp.mean(tf, axis=1, keepdims=True)
    tcen = tf - tmean
    tvar = jnp.mean(tcen * tcen, axis=1, keepdims=True)
    gbt = gbt_ref[...]
    tfeat = tcen * lax.rsqrt(tvar + eps) * gbt[:, 0:1] + gbt[:, 1:2]
    tfeat = jnp.where(tfeat >= 0, tfeat, slope * tfeat)

    # ---- final 4x4 valid conv (Cout = 1), concat-free ------------------------
    z = y4 * wcol_ref[...]                                       # (8ndf, N*16) f32
    img_ch = jnp.dot(z, sel_ref[...], preferred_element_type=jnp.float32)  # (8ndf, N)
    img_part = jnp.sum(img_ch, axis=0, keepdims=True)            # (1, N)
    txt_part = jnp.sum(tfeat * wtxt_ref[...], axis=0, keepdims=True)       # (1, N)
    o_ref[...] = img_part + txt_part


# ----------------------------------------------------------------------------
# pallas_call wrappers
# ----------------------------------------------------------------------------
def _row_tile(rows, max_tile=2048):
    """Largest lane-dense (multiple-of-128) tile of the rows axis dividing rows."""
    if rows <= max_tile:
        return rows
    t = (max_tile // 128) * 128
    while t >= 128:
        if rows % t == 0:
            return t
        t -= 128
    return rows


def conv_lrelu(wmat, patches, *, clamp=None, slope=LRELU_SLOPE, out_dtype=jnp.bfloat16):
    """Fused clamp + conv-as-matmul + LeakyReLU, tiled over the rows (lane) axis."""
    Cout, K = wmat.shape
    K2, rows = patches.shape
    assert K == K2
    tr = _row_tile(rows)
    n_steps = rows // tr
    kern = functools.partial(_conv_act_kernel, clamp=clamp, slope=slope)
    return pl.pallas_call(
        kern,
        out_shape=jax.ShapeDtypeStruct((Cout, rows), out_dtype),
        grid=(n_steps,),
        in_specs=[pl.BlockSpec((Cout, K), lambda i: (0, 0)),
                  pl.BlockSpec((K, tr), lambda i: (0, i))],
        out_specs=pl.BlockSpec((Cout, tr), lambda i: (0, i)),
        compiler_params=pltpu.CompilerParams(
            dimension_semantics=(("parallel",) if n_steps > 1 else ("arbitrary",)),
            vmem_limit_bytes=_VMEM_LIMIT),
    )(wmat, patches)


def conv_bn_lrelu(wmat, patches, gb, *, slope=LRELU_SLOPE, eps=BN_EPS,
                  out_dtype=jnp.bfloat16):
    """Fused conv-as-matmul + BatchNorm(batch stats) + LeakyReLU (grid=(1,))."""
    Cout, K = wmat.shape
    K2, rows = patches.shape
    assert K == K2
    kern = functools.partial(_conv_bn_act_kernel, slope=slope, eps=eps)
    return pl.pallas_call(
        kern,
        out_shape=jax.ShapeDtypeStruct((Cout, rows), out_dtype),
        grid=(1,),
        in_specs=[pl.BlockSpec((Cout, K), lambda i: (0, 0)),
                  pl.BlockSpec((K, rows), lambda i: (0, 0)),
                  pl.BlockSpec((Cout, 2), lambda i: (0, 0))],
        out_specs=pl.BlockSpec((Cout, rows), lambda i: (0, 0)),
        compiler_params=pltpu.CompilerParams(
            dimension_semantics=("arbitrary",),
            vmem_limit_bytes=_VMEM_LIMIT),
    )(wmat, patches, gb)


def tail_fused(w4, p4, gb4, fcw, temb_t, gbt, wcol, wtxt, sel,
               *, slope=LRELU_SLOPE, eps=BN_EPS, tclamp=10.0):
    """One kernel for conv4+BN+LReLU, the text branch, and the final conv."""
    N = temb_t.shape[1]
    kern = functools.partial(_tail_kernel, slope=slope, eps=eps, tclamp=tclamp)
    full = lambda shape: pl.BlockSpec(shape, lambda i: (0, 0))
    return pl.pallas_call(
        kern,
        out_shape=jax.ShapeDtypeStruct((1, N), jnp.float32),
        grid=(1,),
        in_specs=[full(w4.shape), full(p4.shape), full(gb4.shape),
                  full(fcw.shape), full(temb_t.shape), full(gbt.shape),
                  full(wcol.shape), full(wtxt.shape), full(sel.shape)],
        out_specs=full((1, N)),
        compiler_params=pltpu.CompilerParams(
            dimension_semantics=("arbitrary",),
            vmem_limit_bytes=_VMEM_LIMIT),
    )(w4, p4, gb4, fcw, temb_t, gbt, wcol, wtxt, sel)


# ----------------------------------------------------------------------------
# JAX glue: channel-major im2col (no transposes between layers)
# ----------------------------------------------------------------------------
def im2col_cm(x, k, stride, pad):
    """Channel-major im2col: (C, N, H, W) -> (C*k*k, N*Ho*Wo).

    K flattened in (C, kh, kw) order to match w.reshape(Cout, Cin*k*k); the
    rows axis is flattened in (N, Ho, Wo) order so the (Cout, rows) kernel
    output reshapes straight back to (Cout, N, Ho, Wo) with no transpose."""
    C, N, H, W = x.shape
    xp = jnp.pad(x, ((0, 0), (0, 0), (pad, pad), (pad, pad)))
    Ho = (H + 2 * pad - k) // stride + 1
    Wo = (W + 2 * pad - k) // stride + 1
    cols = []
    for di in range(k):
        for dj in range(k):
            cols.append(xp[:, :, di:di + stride * Ho:stride, dj:dj + stride * Wo:stride])
    p = jnp.stack(cols, axis=1)                                   # (C, k*k, N, Ho, Wo)
    return p.reshape(C * k * k, N * Ho * Wo), Ho, Wo


# ----------------------------------------------------------------------------
# Parameters (mirroring _init_weights: conv/linear ~ N(0, 0.01), BN gamma=1
# beta=0, biases=0)
# ----------------------------------------------------------------------------
def init_params(key):
    ks = jax.random.split(key, 6)
    f32 = jnp.float32
    p = {
        "c1": 0.01 * jax.random.normal(ks[0], (NDF, 3, 4, 4), f32),
        "c2": 0.01 * jax.random.normal(ks[1], (NDF * 2, NDF, 4, 4), f32),
        "c3": 0.01 * jax.random.normal(ks[2], (NDF * 4, NDF * 2, 4, 4), f32),
        "c4": 0.01 * jax.random.normal(ks[3], (NDF * 8, NDF * 4, 4, 4), f32),
        "fc_w": 0.01 * jax.random.normal(ks[4], (NDF * 8, EMB), f32),
        # fc bias: zero-init AND exactly cancelled by the training-mode BN mean
        # subtraction -> kept for parity, never enters the compute.
        "fc_b": jnp.zeros((NDF * 8,), f32),
        "c5": 0.01 * jax.random.normal(ks[5], (1, NDF * 16, 4, 4), f32),
    }
    for name, c in (("2", NDF * 2), ("3", NDF * 4), ("4", NDF * 8), ("t", NDF * 8)):
        # packed BatchNorm affine: column 0 = gamma (init 1), column 1 = beta (init 0)
        p["gb" + name] = jnp.concatenate(
            [jnp.ones((c, 1), f32), jnp.zeros((c, 1), f32)], axis=1)
    return p


# ----------------------------------------------------------------------------
# Forward pass (== Stage1Discriminator.forward, return_features=False)
# ----------------------------------------------------------------------------
def stage1_discriminator_forward(params, image, text_embedding):
    N = image.shape[0]

    # channel-major activations end-to-end; a single tiny transpose of the image
    x = jnp.transpose(image, (1, 0, 2, 3))                                 # (3, N, 64, 64)

    # conv1 + LeakyReLU (image clamp(-1,1) fused into the kernel, f32 clamp)
    p1, Ho, Wo = im2col_cm(x, 4, 2, 1)
    h = conv_lrelu(params["c1"].reshape(NDF, -1), p1, clamp=(-1.0, 1.0))
    h = h.reshape(NDF, N, Ho, Wo)                                          # (ndf, N, 32, 32)

    # conv2 / conv3 : fused conv + BatchNorm(batch stats) + LeakyReLU
    p2, Ho, Wo = im2col_cm(h, 4, 2, 1)
    h = conv_bn_lrelu(params["c2"].reshape(NDF * 2, -1), p2, params["gb2"])
    h = h.reshape(NDF * 2, N, Ho, Wo)                                      # (2ndf, N, 16, 16)

    p3, Ho, Wo = im2col_cm(h, 4, 2, 1)
    h = conv_bn_lrelu(params["c3"].reshape(NDF * 4, -1), p3, params["gb3"])
    h = h.reshape(NDF * 4, N, Ho, Wo)                                      # (4ndf, N, 8, 8)

    # fused tail: conv4+BN+LReLU, text branch, final 4x4 valid conv -> (1, N)
    p4, Ho, Wo = im2col_cm(h, 4, 2, 1)                                     # (512, N*16)
    w5 = params["c5"][0]                                                   # (16ndf, 4, 4)
    w_img = w5[:NDF * 8].reshape(NDF * 8, Ho * Wo)                         # (8ndf, 16)
    wcol = jnp.tile(w_img, (1, N))                                         # (8ndf, N*16)
    wtxt = jnp.sum(w5[NDF * 8:], axis=(1, 2)).reshape(NDF * 8, 1)          # (8ndf, 1)
    sel = jnp.repeat(jnp.eye(N, dtype=jnp.float32), Ho * Wo, axis=0)       # (N*16, N) 0/1
    out = tail_fused(params["c4"].reshape(NDF * 8, -1), p4, params["gb4"],
                     params["fc_w"], text_embedding.T, params["gbt"],
                     wcol, wtxt, sel)                                      # (1, N)

    # PyTorch .squeeze(); indexed explicitly so the batch dim survives N == 1.
    return out[0]                                                          # (N,)


if __name__ == "__main__":
    key = jax.random.PRNGKey(0)
    k_param, k_img, k_txt = jax.random.split(key, 3)

    params = init_params(k_param)
    image = jnp.tanh(jax.random.normal(k_img, (2, 3, 64, 64), jnp.float32))   # roughly in [-1, 1]
    text_embedding = jax.random.normal(k_txt, (2, EMB), jnp.float32)

    fwd = jax.jit(stage1_discriminator_forward)
    out = jax.block_until_ready(fwd(params, image, text_embedding))
    assert out.shape == (2,), out.shape
    print("KERNEL_OK")
</pallas_src>

<mosaic_0001>
module attributes {stable_mosaic.version = 11 : i64} {
  func.func @_conv_act_kernel(%arg0: i32, %arg1: memref<8x48xf32, #tpu.memory_space<vmem>>, %arg2: memref<48x2048xf32, #tpu.memory_space<vmem>>, %arg3: memref<8x2048xbf16, #tpu.memory_space<vmem>>) attributes {dimension_semantics = [#tpu.dimension_semantics<arbitrary>], iteration_bounds = array<i64: 1>, scalar_prefetch = 0 : i64, scratch_operands = 0 : i64, tpu.core_type = #tpu.core_type<tc>, window_params = [{pipeline_mode = #tpu.pipeline_mode<synchronous>, transform_indices = @transform_0, window_bounds = array<i64: 8, 48>}, {transform_indices = @transform_1, window_bounds = array<i64: 48, 2048>}, {transform_indices = @transform_2, window_bounds = array<i64: 8, 2048>}]} {
    %c0 = arith.constant 0 : index
    %c0_0 = arith.constant 0 : index
    %0 = vector.load %arg2[%c0, %c0_0] : memref<48x2048xf32, #tpu.memory_space<vmem>>, vector<48x2048xf32>
    %cst = arith.constant -1.000000e+00 : f32
    %cst_1 = arith.constant 1.000000e+00 : f32
    %1 = vector.broadcast %cst : f32 to vector<48x2048xf32>
    %2 = arith.maximumf %1, %0 : vector<48x2048xf32>
    %3 = vector.broadcast %cst_1 : f32 to vector<48x2048xf32>
    %4 = arith.minimumf %3, %2 : vector<48x2048xf32>
    %c0_2 = arith.constant 0 : index
    %c0_3 = arith.constant 0 : index
    %5 = vector.load %arg1[%c0_2, %c0_3] : memref<8x48xf32, #tpu.memory_space<vmem>>, vector<8x48xf32>
    %6 = arith.truncf %5 : vector<8x48xf32> to vector<8x48xbf16>
    %7 = arith.truncf %4 : vector<48x2048xf32> to vector<48x2048xbf16>
    %cst_4 = arith.constant dense<0.000000e+00> : vector<8x2048xf32>
    %8 = tpu.matmul %6, %7, %cst_4 {dimension_numbers = #tpu.dot_dimension_numbers<[1], [0], [0], [1], [0, 0, 1, 1], [], []>} : vector<8x48xbf16>, vector<48x2048xbf16>, vector<8x2048xf32> -> vector<8x2048xf32>
    %cst_5 = arith.constant 0.000000e+00 : f32
    %9 = vector.broadcast %cst_5 : f32 to vector<8x2048xf32>
    %10 = arith.cmpf oge, %8, %9 : vector<8x2048xf32>
    %cst_6 = arith.constant 2.000000e-01 : f32
    %11 = vector.broadcast %cst_6 : f32 to vector<8x2048xf32>
    %12 = arith.mulf %11, %8 : vector<8x2048xf32>
    %13 = arith.select %10, %8, %12 : vector<8x2048xi1>, vector<8x2048xf32>
    %14 = arith.truncf %13 : vector<8x2048xf32> to vector<8x2048xbf16>
    %c0_7 = arith.constant 0 : index
    %c0_8 = arith.constant 0 : index
    %15 = vector.load %arg3[%c0_7, %c0_8] : memref<8x2048xbf16, #tpu.memory_space<vmem>>, vector<8x2048xbf16>
    tpu.vector_store %arg3[%c0_7, %c0_8], %14 {strides = array<i32>} : memref<8x2048xbf16, #tpu.memory_space<vmem>>, vector<8x2048xbf16>,
    return
  }
  func.func @transform_0(%arg0: i32) -> (i32, i32) {
    %c0_i32 = arith.constant 0 : i32
    %c0_i32_0 = arith.constant 0 : i32
    %c0_i32_1 = arith.constant 0 : i32
    return %c0_i32, %c0_i32_0 : i32, i32
  }
  func.func @transform_1(%arg0: i32) -> (i32, i32) {
    %c0_i32 = arith.constant 0 : i32
    %c0_i32_0 = arith.constant 0 : i32
    return %c0_i32, %arg0 : i32, i32
  }
  func.func @transform_2(%arg0: i32) -> (i32, i32) {
    %c0_i32 = arith.constant 0 : i32
    %c0_i32_0 = arith.constant 0 : i32
    return %c0_i32, %arg0 : i32, i32
  }
}

module attributes {stable_mosaic.version = 11 : i64} {
  func.func @_conv_bn_act_kernel(%arg0: i32, %arg1: memref<16x128xf32, #tpu.memory_space<vmem>>, %arg2: memref<128x512xbf16, #tpu.memory_space<vmem>>, %arg3: memref<16x2xf32, #tpu.memory_space<vmem>>, %arg4: memref<16x512xbf16, #tpu.memory_space<vmem>>) attributes {dimension_semantics = [#tpu.dimension_semantics<arbitrary>], iteration_bounds = array<i64: 1>, scalar_prefetch = 0 : i64, scratch_operands = 0 : i64, tpu.core_type = #tpu.core_type<tc>, window_params = [{pipeline_mode = #tpu.pipeline_mode<synchronous>, transform_indices = @transform_0, window_bounds = array<i64: 16, 128>}, {pipeline_mode = #tpu.pipeline_mode<synchronous>, transform_indices = @transform_1, window_bounds = array<i64: 128, 512>}, {pipeline_mode = #tpu.pipeline_mode<synchronous>, transform_indices = @transform_2, window_bounds = array<i64: 16, 2>}, {pipeline_mode = #tpu.pipeline_mode<synchronous>, transform_indices = @transform_3, window_bounds = array<i64: 16, 512>}]} {
    %c0 = arith.constant 0 : index
    %c0_0 = arith.constant 0 : index
    %0 = vector.load %arg1[%c0, %c0_0] : memref<16x128xf32, #tpu.memory_space<vmem>>, vector<16x128xf32>
    %1 = arith.truncf %0 : vector<16x128xf32> to vector<16x128xbf16>
    %c0_1 = arith.constant 0 : index
    %c0_2 = arith.constant 0 : index
    %2 = vector.load %arg2[%c0_1, %c0_2] : memref<128x512xbf16, #tpu.memory_space<vmem>>, vector<128x512xbf16>
    %cst = arith.constant dense<0.000000e+00> : vector<16x512xf32>
    %3 = tpu.matmul %1, %2, %cst {dimension_numbers = #tpu.dot_dimension_numbers<[1], [0], [0], [1], [0, 0, 1, 1], [], []>} : vector<16x128xbf16>, vector<128x512xbf16>, vector<16x512xf32> -> vector<16x512xf32>
    %cst_3 = arith.constant dense<0.000000e+00> : vector<16xf32>
    %4 = vector.multi_reduction <add>, %3, %cst_3 [1] : vector<16x512xf32> to vector<16xf32>
    %5 = vector.shape_cast %4 : vector<16xf32> to vector<16x1xf32>
    %cst_4 = arith.constant 5.120000e+02 : f32
    %6 = vector.broadcast %cst_4 : f32 to vector<16x1xf32>
    %7 = arith.divf %5, %6 : vector<16x1xf32>
    %8 = vector.broadcast %7 : vector<16x1xf32> to vector<16x512xf32>
    %9 = arith.subf %3, %8 : vector<16x512xf32>
    %10 = arith.mulf %9, %9 : vector<16x512xf32>
    %cst_5 = arith.constant dense<0.000000e+00> : vector<16xf32>
    %11 = vector.multi_reduction <add>, %10, %cst_5 [1] : vector<16x512xf32> to vector<16xf32>
    %12 = vector.shape_cast %11 : vector<16xf32> to vector<16x1xf32>
    %cst_6 = arith.constant 5.120000e+02 : f32
    %13 = vector.broadcast %cst_6 : f32 to vector<16x1xf32>
    %14 = arith.divf %12, %13 : vector<16x1xf32>
    %c0_7 = arith.constant 0 : index
    %c0_8 = arith.constant 0 : index
    %15 = vector.load %arg3[%c0_7, %c0_8] : memref<16x2xf32, #tpu.memory_space<vmem>>, vector<16x2xf32>
    %cst_9 = arith.constant 9.99999974E-6 : f32
    %16 = vector.broadcast %cst_9 : f32 to vector<16x1xf32>
    %17 = arith.addf %14, %16 : vector<16x1xf32>
    %18 = math.rsqrt %17 : vector<16x1xf32>
    %19 = vector.broadcast %18 : vector<16x1xf32> to vector<16x512xf32>
    %20 = arith.mulf %9, %19 : vector<16x512xf32>
    %21 = vector.extract_strided_slice %15 {offsets = [0, 0], sizes = [16, 1], strides = [1, 1]} : vector<16x2xf32> to vector<16x1xf32>
    %22 = vector.broadcast %21 : vector<16x1xf32> to vector<16x512xf32>
    %23 = arith.mulf %20, %22 : vector<16x512xf32>
    %24 = vector.extract_strided_slice %15 {offsets = [0, 1], sizes = [16, 1], strides = [1, 1]} : vector<16x2xf32> to vector<16x1xf32>
    %25 = vector.broadcast %24 : vector<16x1xf32> to vector<16x512xf32>
    %26 = arith.addf %23, %25 : vector<16x512xf32>
    %cst_10 = arith.constant 0.000000e+00 : f32
    %27 = vector.broadcast %cst_10 : f32 to vector<16x512xf32>
    %28 = arith.cmpf oge, %26, %27 : vector<16x512xf32>
    %cst_11 = arith.constant 2.000000e-01 : f32
    %29 = vector.broadcast %cst_11 : f32 to vector<16x512xf32>
    %30 = arith.mulf %29, %26 : vector<16x512xf32>
    %31 = arith.select %28, %26, %30 : vector<16x512xi1>, vector<16x512xf32>
    %32 = arith.truncf %31 : vector<16x512xf32> to vector<16x512xbf16>
    %c0_12 = arith.constant 0 : index
    %c0_13 = arith.constant 0 : index
    %33 = vector.load %arg4[%c0_12, %c0_13] : memref<16x512xbf16, #tpu.memory_space<vmem>>, vector<16x512xbf16>
    tpu.vector_store %arg4[%c0_12, %c0_13], %32 {strides = array<i32>} : memref<16x512xbf16, #tpu.memory_space<vmem>>, vector<16x512xbf16>,
    return
  }
  func.func @transform_0(%arg0: i32) -> (i32, i32) {
    %c0_i32 = arith.constant 0 : i32
    %c0_i32_0 = arith.constant 0 : i32
    %c0_i32_1 = arith.constant 0 : i32
    return %c0_i32, %c0_i32_0 : i32, i32
  }
  func.func @transform_1(%arg0: i32) -> (i32, i32) {
    %c0_i32 = arith.constant 0 : i32
    %c0_i32_0 = arith.constant 0 : i32
    %c0_i32_1 = arith.constant 0 : i32
    return %c0_i32, %c0_i32_0 : i32, i32
  }
  func.func @transform_2(%arg0: i32) -> (i32, i32) {
    %c0_i32 = arith.constant 0 : i32
    %c0_i32_0 = arith.constant 0 : i32
    %c0_i32_1 = arith.constant 0 : i32
    return %c0_i32, %c0_i32_0 : i32, i32
  }
  func.func @transform_3(%arg0: i32) -> (i32, i32) {
    %c0_i32 = arith.constant 0 : i32
    %c0_i32_0 = arith.constant 0 : i32
    %c0_i32_1 = arith.constant 0 : i32
    return %c0_i32, %c0_i32_0 : i32, i32
  }
}

module attributes {stable_mosaic.version = 11 : i64} {
  func.func @_conv_bn_act_kernel(%arg0: i32, %arg1: memref<32x256xf32, #tpu.memory_space<vmem>>, %arg2: memref<256x128xbf16, #tpu.memory_space<vmem>>, %arg3: memref<32x2xf32, #tpu.memory_space<vmem>>, %arg4: memref<32x128xbf16, #tpu.memory_space<vmem>>) attributes {dimension_semantics = [#tpu.dimension_semantics<arbitrary>], iteration_bounds = array<i64: 1>, scalar_prefetch = 0 : i64, scratch_operands = 0 : i64, tpu.core_type = #tpu.core_type<tc>, window_params = [{pipeline_mode = #tpu.pipeline_mode<synchronous>, transform_indices = @transform_0, window_bounds = array<i64: 32, 256>}, {pipeline_mode = #tpu.pipeline_mode<synchronous>, transform_indices = @transform_1, window_bounds = array<i64: 256, 128>}, {pipeline_mode = #tpu.pipeline_mode<synchronous>, transform_indices = @transform_2, window_bounds = array<i64: 32, 2>}, {pipeline_mode = #tpu.pipeline_mode<synchronous>, transform_indices = @transform_3, window_bounds = array<i64: 32, 128>}]} {
    %c0 = arith.constant 0 : index
    %c0_0 = arith.constant 0 : index
    %0 = vector.load %arg1[%c0, %c0_0] : memref<32x256xf32, #tpu.memory_space<vmem>>, vector<32x256xf32>
    %1 = arith.truncf %0 : vector<32x256xf32> to vector<32x256xbf16>
    %c0_1 = arith.constant 0 : index
    %c0_2 = arith.constant 0 : index
    %2 = vector.load %arg2[%c0_1, %c0_2] : memref<256x128xbf16, #tpu.memory_space<vmem>>, vector<256x128xbf16>
    %cst = arith.constant dense<0.000000e+00> : vector<32x128xf32>
    %3 = tpu.matmul %1, %2, %cst {dimension_numbers = #tpu.dot_dimension_numbers<[1], [0], [0], [1], [0, 0, 1, 1], [], []>} : vector<32x256xbf16>, vector<256x128xbf16>, vector<32x128xf32> -> vector<32x128xf32>
    %cst_3 = arith.constant dense<0.000000e+00> : vector<32xf32>
    %4 = vector.multi_reduction <add>, %3, %cst_3 [1] : vector<32x128xf32> to vector<32xf32>
    %5 = vector.shape_cast %4 : vector<32xf32> to vector<32x1xf32>
    %cst_4 = arith.constant 1.280000e+02 : f32
    %6 = vector.broadcast %cst_4 : f32 to vector<32x1xf32>
    %7 = arith.divf %5, %6 : vector<32x1xf32>
    %8 = vector.broadcast %7 : vector<32x1xf32> to vector<32x128xf32>
    %9 = arith.subf %3, %8 : vector<32x128xf32>
    %10 = arith.mulf %9, %9 : vector<32x128xf32>
    %cst_5 = arith.constant dense<0.000000e+00> : vector<32xf32>
    %11 = vector.multi_reduction <add>, %10, %cst_5 [1] : vector<32x128xf32> to vector<32xf32>
    %12 = vector.shape_cast %11 : vector<32xf32> to vector<32x1xf32>
    %cst_6 = arith.constant 1.280000e+02 : f32
    %13 = vector.broadcast %cst_6 : f32 to vector<32x1xf32>
    %14 = arith.divf %12, %13 : vector<32x1xf32>
    %c0_7 = arith.constant 0 : index
    %c0_8 = arith.constant 0 : index
    %15 = vector.load %arg3[%c0_7, %c0_8] : memref<32x2xf32, #tpu.memory_space<vmem>>, vector<32x2xf32>
    %cst_9 = arith.constant 9.99999974E-6 : f32
    %16 = vector.broadcast %cst_9 : f32 to vector<32x1xf32>
    %17 = arith.addf %14, %16 : vector<32x1xf32>
    %18 = math.rsqrt %17 : vector<32x1xf32>
    %19 = vector.broadcast %18 : vector<32x1xf32> to vector<32x128xf32>
    %20 = arith.mulf %9, %19 : vector<32x128xf32>
    %21 = vector.extract_strided_slice %15 {offsets = [0, 0], sizes = [32, 1], strides = [1, 1]} : vector<32x2xf32> to vector<32x1xf32>
    %22 = vector.broadcast %21 : vector<32x1xf32> to vector<32x128xf32>
    %23 = arith.mulf %20, %22 : vector<32x128xf32>
    %24 = vector.extract_strided_slice %15 {offsets = [0, 1], sizes = [32, 1], strides = [1, 1]} : vector<32x2xf32> to vector<32x1xf32>
    %25 = vector.broadcast %24 : vector<32x1xf32> to vector<32x128xf32>
    %26 = arith.addf %23, %25 : vector<32x128xf32>
    %cst_10 = arith.constant 0.000000e+00 : f32
    %27 = vector.broadcast %cst_10 : f32 to vector<32x128xf32>
    %28 = arith.cmpf oge, %26, %27 : vector<32x128xf32>
    %cst_11 = arith.constant 2.000000e-01 : f32
    %29 = vector.broadcast %cst_11 : f32 to vector<32x128xf32>
    %30 = arith.mulf %29, %26 : vector<32x128xf32>
    %31 = arith.select %28, %26, %30 : vector<32x128xi1>, vector<32x128xf32>
    %32 = arith.truncf %31 : vector<32x128xf32> to vector<32x128xbf16>
    %c0_12 = arith.constant 0 : index
    %c0_13 = arith.constant 0 : index
    %33 = vector.load %arg4[%c0_12, %c0_13] : memref<32x128xbf16, #tpu.memory_space<vmem>>, vector<32x128xbf16>
    tpu.vector_store %arg4[%c0_12, %c0_13], %32 {strides = array<i32>} : memref<32x128xbf16, #tpu.memory_space<vmem>>, vector<32x128xbf16>,
    return
  }
  func.func @transform_0(%arg0: i32) -> (i32, i32) {
    %c0_i32 = arith.constant 0 : i32
    %c0_i32_0 = arith.constant 0 : i32
    %c0_i32_1 = arith.constant 0 : i32
    return %c0_i32, %c0_i32_0 : i32, i32
  }
  func.func @transform_1(%arg0: i32) -> (i32, i32) {
    %c0_i32 = arith.constant 0 : i32
    %c0_i32_0 = arith.constant 0 : i32
    %c0_i32_1 = arith.constant 0 : i32
    return %c0_i32, %c0_i32_0 : i32, i32
  }
  func.func @transform_2(%arg0: i32) -> (i32, i32) {
    %c0_i32 = arith.constant 0 : i32
    %c0_i32_0 = arith.constant 0 : i32
    %c0_i32_1 = arith.constant 0 : i32
    return %c0_i32, %c0_i32_0 : i32, i32
  }
  func.func @transform_3(%arg0: i32) -> (i32, i32) {
    %c0_i32 = arith.constant 0 : i32
    %c0_i32_0 = arith.constant 0 : i32
    %c0_i32_1 = arith.constant 0 : i32
    return %c0_i32, %c0_i32_0 : i32, i32
  }
}

module attributes {stable_mosaic.version = 11 : i64} {
  func.func @_tail_kernel(%arg0: i32, %arg1: memref<64x512xf32, #tpu.memory_space<vmem>>, %arg2: memref<512x32xbf16, #tpu.memory_space<vmem>>, %arg3: memref<64x2xf32, #tpu.memory_space<vmem>>, %arg4: memref<64x32xf32, #tpu.memory_space<vmem>>, %arg5: memref<32x2xf32, #tpu.memory_space<vmem>>, %arg6: memref<64x2xf32, #tpu.memory_space<vmem>>, %arg7: memref<64x32xf32, #tpu.memory_space<vmem>>, %arg8: memref<64x1xf32, #tpu.memory_space<vmem>>, %arg9: memref<32x2xf32, #tpu.memory_space<vmem>>, %arg10: memref<1x2xf32, #tpu.memory_space<vmem>>) attributes {dimension_semantics = [#tpu.dimension_semantics<arbitrary>], iteration_bounds = array<i64: 1>, scalar_prefetch = 0 : i64, scratch_operands = 0 : i64, tpu.core_type = #tpu.core_type<tc>, window_params = [{pipeline_mode = #tpu.pipeline_mode<synchronous>, transform_indices = @transform_0, window_bounds = array<i64: 64, 512>}, {pipeline_mode = #tpu.pipeline_mode<synchronous>, transform_indices = @transform_1, window_bounds = array<i64: 512, 32>}, {pipeline_mode = #tpu.pipeline_mode<synchronous>, transform_indices = @transform_2, window_bounds = array<i64: 64, 2>}, {pipeline_mode = #tpu.pipeline_mode<synchronous>, transform_indices = @transform_3, window_bounds = array<i64: 64, 32>}, {pipeline_mode = #tpu.pipeline_mode<synchronous>, transform_indices = @transform_4, window_bounds = array<i64: 32, 2>}, {pipeline_mode = #tpu.pipeline_mode<synchronous>, transform_indices = @transform_5, window_bounds = array<i64: 64, 2>}, {pipeline_mode = #tpu.pipeline_mode<synchronous>, transform_indices = @transform_6, window_bounds = array<i64: 64, 32>}, {pipeline_mode = #tpu.pipeline_mode<synchronous>, transform_indices = @transform_7, window_bounds = array<i64: 64, 1>}, {pipeline_mode = #tpu.pipeline_mode<synchronous>, transform_indices = @transform_8, window_bounds = array<i64: 32, 2>}, {pipeline_mode = #tpu.pipeline_mode<synchronous>, transform_indices = @transform_9, window_bounds = array<i64: 1, 2>}]} {
    %c0 = arith.constant 0 : index
    %c0_0 = arith.constant 0 : index
    %0 = vector.load %arg1[%c0, %c0_0] : memref<64x512xf32, #tpu.memory_space<vmem>>, vector<64x512xf32>
    %1 = arith.truncf %0 : vector<64x512xf32> to vector<64x512xbf16>
    %c0_1 = arith.constant 0 : index
    %c0_2 = arith.constant 0 : index
    %2 = vector.load %arg2[%c0_1, %c0_2] : memref<512x32xbf16, #tpu.memory_space<vmem>>, vector<512x32xbf16>
    %cst = arith.constant dense<0.000000e+00> : vector<64x32xf32>
    %3 = tpu.matmul %1, %2, %cst {dimension_numbers = #tpu.dot_dimension_numbers<[1], [0], [0], [1], [0, 0, 1, 1], [], []>} : vector<64x512xbf16>, vector<512x32xbf16>, vector<64x32xf32> -> vector<64x32xf32>
    %cst_3 = arith.constant dense<0.000000e+00> : vector<64xf32>
    %4 = vector.multi_reduction <add>, %3, %cst_3 [1] : vector<64x32xf32> to vector<64xf32>
    %5 = vector.shape_cast %4 : vector<64xf32> to vector<64x1xf32>
    %cst_4 = arith.constant 3.200000e+01 : f32
    %6 = vector.broadcast %cst_4 : f32 to vector<64x1xf32>
    %7 = arith.divf %5, %6 : vector<64x1xf32>
    %8 = vector.broadcast %7 : vector<64x1xf32> to vector<64x32xf32>
    %9 = arith.subf %3, %8 : vector<64x32xf32>
    %10 = arith.mulf %9, %9 : vector<64x32xf32>
    %cst_5 = arith.constant dense<0.000000e+00> : vector<64xf32>
    %11 = vector.multi_reduction <add>, %10, %cst_5 [1] : vector<64x32xf32> to vector<64xf32>
    %12 = vector.shape_cast %11 : vector<64xf32> to vector<64x1xf32>
    %cst_6 = arith.constant 3.200000e+01 : f32
    %13 = vector.broadcast %cst_6 : f32 to vector<64x1xf32>
    %14 = arith.divf %12, %13 : vector<64x1xf32>
    %c0_7 = arith.constant 0 : index
    %c0_8 = arith.constant 0 : index
    %15 = vector.load %arg3[%c0_7, %c0_8] : memref<64x2xf32, #tpu.memory_space<vmem>>, vector<64x2xf32>
    %cst_9 = arith.constant 9.99999974E-6 : f32
    %16 = vector.broadcast %cst_9 : f32 to vector<64x1xf32>
    %17 = arith.addf %14, %16 : vector<64x1xf32>
    %18 = math.rsqrt %17 : vector<64x1xf32>
    %19 = vector.broadcast %18 : vector<64x1xf32> to vector<64x32xf32>
    %20 = arith.mulf %9, %19 : vector<64x32xf32>
    %21 = vector.extract_strided_slice %15 {offsets = [0, 0], sizes = [64, 1], strides = [1, 1]} : vector<64x2xf32> to vector<64x1xf32>
    %22 = vector.broadcast %21 : vector<64x1xf32> to vector<64x32xf32>
    %23 = arith.mulf %20, %22 : vector<64x32xf32>
    %24 = vector.extract_strided_slice %15 {offsets = [0, 1], sizes = [64, 1], strides = [1, 1]} : vector<64x2xf32> to vector<64x1xf32>
    %25 = vector.broadcast %24 : vector<64x1xf32> to vector<64x32xf32>
    %26 = arith.addf %23, %25 : vector<64x32xf32>
    %cst_10 = arith.constant 0.000000e+00 : f32
    %27 = vector.broadcast %cst_10 : f32 to vector<64x32xf32>
    %28 = arith.cmpf oge, %26, %27 : vector<64x32xf32>
    %cst_11 = arith.constant 2.000000e-01 : f32
    %29 = vector.broadcast %cst_11 : f32 to vector<64x32xf32>
    %30 = arith.mulf %29, %26 : vector<64x32xf32>
    %31 = arith.select %28, %26, %30 : vector<64x32xi1>, vector<64x32xf32>
    %c0_12 = arith.constant 0 : index
    %c0_13 = arith.constant 0 : index
    %32 = vector.load %arg5[%c0_12, %c0_13] : memref<32x2xf32, #tpu.memory_space<vmem>>, vector<32x2xf32>
    %cst_14 = arith.constant -1.000000e+01 : f32
    %cst_15 = arith.constant 1.000000e+01 : f32
    %33 = vector.broadcast %cst_14 : f32 to vector<32x2xf32>
    %34 = arith.maximumf %33, %32 : vector<32x2xf32>
    %35 = vector.broadcast %cst_15 : f32 to vector<32x2xf32>
    %36 = arith.minimumf %35, %34 : vector<32x2xf32>
    %c0_16 = arith.constant 0 : index
    %c0_17 = arith.constant 0 : index
    %37 = vector.load %arg4[%c0_16, %c0_17] : memref<64x32xf32, #tpu.memory_space<vmem>>, vector<64x32xf32>
    %38 = arith.truncf %37 : vector<64x32xf32> to vector<64x32xbf16>
    %39 = arith.truncf %36 : vector<32x2xf32> to vector<32x2xbf16>
    %cst_18 = arith.constant dense<0.000000e+00> : vector<64x2xf32>
    %40 = tpu.matmul %38, %39, %cst_18 {dimension_numbers = #tpu.dot_dimension_numbers<[1], [0], [0], [1], [0, 0, 1, 1], [], []>} : vector<64x32xbf16>, vector<32x2xbf16>, vector<64x2xf32> -> vector<64x2xf32>
    %cst_19 = arith.constant dense<0.000000e+00> : vector<64xf32>
    %41 = vector.multi_reduction <add>, %40, %cst_19 [1] : vector<64x2xf32> to vector<64xf32>
    %42 = vector.shape_cast %41 : vector<64xf32> to vector<64x1xf32>
    %cst_20 = arith.constant 2.000000e+00 : f32
    %43 = vector.broadcast %cst_20 : f32 to vector<64x1xf32>
    %44 = arith.divf %42, %43 : vector<64x1xf32>
    %45 = vector.broadcast %44 : vector<64x1xf32> to vector<64x2xf32>
    %46 = arith.subf %40, %45 : vector<64x2xf32>
    %47 = arith.mulf %46, %46 : vector<64x2xf32>
    %cst_21 = arith.constant dense<0.000000e+00> : vector<64xf32>
    %48 = vector.multi_reduction <add>, %47, %cst_21 [1] : vector<64x2xf32> to vector<64xf32>
    %49 = vector.shape_cast %48 : vector<64xf32> to vector<64x1xf32>
    %cst_22 = arith.constant 2.000000e+00 : f32
    %50 = vector.broadcast %cst_22 : f32 to vector<64x1xf32>
    %51 = arith.divf %49, %50 : vector<64x1xf32>
    %c0_23 = arith.constant 0 : index
    %c0_24 = arith.constant 0 : index
    %52 = vector.load %arg6[%c0_23, %c0_24] : memref<64x2xf32, #tpu.memory_space<vmem>>, vector<64x2xf32>
    %cst_25 = arith.constant 9.99999974E-6 : f32
    %53 = vector.broadcast %cst_25 : f32 to vector<64x1xf32>
    %54 = arith.addf %51, %53 : vector<64x1xf32>
    %55 = math.rsqrt %54 : vector<64x1xf32>
    %56 = vector.broadcast %55 : vector<64x1xf32> to vector<64x2xf32>
    %57 = arith.mulf %46, %56 : vector<64x2xf32>
    %58 = vector.extract_strided_slice %52 {offsets = [0, 0], sizes = [64, 1], strides = [1, 1]} : vector<64x2xf32> to vector<64x1xf32>
    %59 = vector.broadcast %58 : vector<64x1xf32> to vector<64x2xf32>
    %60 = arith.mulf %57, %59 : vector<64x2xf32>
    %61 = vector.extract_strided_slice %52 {offsets = [0, 1], sizes = [64, 1], strides = [1, 1]} : vector<64x2xf32> to vector<64x1xf32>
    %62 = vector.broadcast %61 : vector<64x1xf32> to vector<64x2xf32>
    %63 = arith.addf %60, %62 : vector<64x2xf32>
    %cst_26 = arith.constant 0.000000e+00 : f32
    %64 = vector.broadcast %cst_26 : f32 to vector<64x2xf32>
    %65 = arith.cmpf oge, %63, %64 : vector<64x2xf32>
    %cst_27 = arith.constant 2.000000e-01 : f32
    %66 = vector.broadcast %cst_27 : f32 to vector<64x2xf32>
    %67 = arith.mulf %66, %63 : vector<64x2xf32>
    %68 = arith.select %65, %63, %67 : vector<64x2xi1>, vector<64x2xf32>
    %c0_28 = arith.constant 0 : index
    %c0_29 = arith.constant 0 : index
    %69 = vector.load %arg7[%c0_28, %c0_29] : memref<64x32xf32, #tpu.memory_space<vmem>>, vector<64x32xf32>
    %70 = arith.mulf %31, %69 : vector<64x32xf32>
    %c0_30 = arith.constant 0 : index
    %c0_31 = arith.constant 0 : index
    %71 = vector.load %arg9[%c0_30, %c0_31] : memref<32x2xf32, #tpu.memory_space<vmem>>, vector<32x2xf32>
    %cst_32 = arith.constant dense<0.000000e+00> : vector<64x2xf32>
    %72 = tpu.matmul %70, %71, %cst_32 {dimension_numbers = #tpu.dot_dimension_numbers<[1], [0], [0], [1], [0, 0, 1, 1], [], []>} : vector<64x32xf32>, vector<32x2xf32>, vector<64x2xf32> -> vector<64x2xf32>
    %cst_33 = arith.constant dense<0.000000e+00> : vector<2xf32>
    %73 = vector.multi_reduction <add>, %72, %cst_33 [0] : vector<64x2xf32> to vector<2xf32>
    %74 = vector.shape_cast %73 : vector<2xf32> to vector<1x2xf32>
    %c0_34 = arith.constant 0 : index
    %c0_35 = arith.constant 0 : index
    %75 = vector.load %arg8[%c0_34, %c0_35] : memref<64x1xf32, #tpu.memory_space<vmem>>, vector<64x1xf32>
    %76 = vector.broadcast %75 : vector<64x1xf32> to vector<64x2xf32>
    %77 = arith.mulf %68, %76 : vector<64x2xf32>
    %cst_36 = arith.constant dense<0.000000e+00> : vector<2xf32>
    %78 = vector.multi_reduction <add>, %77, %cst_36 [0] : vector<64x2xf32> to vector<2xf32>
    %79 = vector.shape_cast %78 : vector<2xf32> to vector<1x2xf32>
    %80 = arith.addf %74, %79 : vector<1x2xf32>
    %c0_37 = arith.constant 0 : index
    %c0_38 = arith.constant 0 : index
    %81 = vector.load %arg10[%c0_37, %c0_38] : memref<1x2xf32, #tpu.memory_space<vmem>>, vector<1x2xf32>
    tpu.vector_store %arg10[%c0_37, %c0_38], %80 {strides = array<i32>} : memref<1x2xf32, #tpu.memory_space<vmem>>, vector<1x2xf32>,
    return
  }
  func.func @transform_0(%arg0: i32) -> (i32, i32) {
    %c0_i32 = arith.constant 0 : i32
    %c0_i32_0 = arith.constant 0 : i32
    %c0_i32_1 = arith.constant 0 : i32
    return %c0_i32, %c0_i32_0 : i32, i32
  }
  func.func @transform_1(%arg0: i32) -> (i32, i32) {
    %c0_i32 = arith.constant 0 : i32
    %c0_i32_0 = arith.constant 0 : i32
    %c0_i32_1 = arith.constant 0 : i32
    return %c0_i32, %c0_i32_0 : i32, i32
  }
  func.func @transform_2(%arg0: i32) -> (i32, i32) {
    %c0_i32 = arith.constant 0 : i32
    %c0_i32_0 = arith.constant 0 : i32
    %c0_i32_1 = arith.constant 0 : i32
    return %c0_i32, %c0_i32_0 : i32, i32
  }
  func.func @transform_3(%arg0: i32) -> (i32, i32) {
    %c0_i32 = arith.constant 0 : i32
    %c0_i32_0 = arith.constant 0 : i32
    %c0_i32_1 = arith.constant 0 : i32
    return %c0_i32, %c0_i32_0 : i32, i32
  }
  func.func @transform_4(%arg0: i32) -> (i32, i32) {
    %c0_i32 = arith.constant 0 : i32
    %c0_i32_0 = arith.constant 0 : i32
    %c0_i32_1 = arith.constant 0 : i32
    return %c0_i32, %c0_i32_0 : i32, i32
  }
  func.func @transform_5(%arg0: i32) -> (i32, i32) {
    %c0_i32 = arith.constant 0 : i32
    %c0_i32_0 = arith.constant 0 : i32
    %c0_i32_1 = arith.constant 0 : i32
    return %c0_i32, %c0_i32_0 : i32, i32
  }
  func.func @transform_6(%arg0: i32) -> (i32, i32) {
    %c0_i32 = arith.constant 0 : i32
    %c0_i32_0 = arith.constant 0 : i32
    %c0_i32_1 = arith.constant 0 : i32
    return %c0_i32, %c0_i32_0 : i32, i32
  }
  func.func @transform_7(%arg0: i32) -> (i32, i32) {
    %c0_i32 = arith.constant 0 : i32
    %c0_i32_0 = arith.constant 0 : i32
    %c0_i32_1 = arith.constant 0 : i32
    return %c0_i32, %c0_i32_0 : i32, i32
  }
  func.func @transform_8(%arg0: i32) -> (i32, i32) {
    %c0_i32 = arith.constant 0 : i32
    %c0_i32_0 = arith.constant 0 : i32
    %c0_i32_1 = arith.constant 0 : i32
    return %c0_i32, %c0_i32_0 : i32, i32
  }
  func.func @transform_9(%arg0: i32) -> (i32, i32) {
    %c0_i32 = arith.constant 0 : i32
    %c0_i32_0 = arith.constant 0 : i32
    %c0_i32_1 = arith.constant 0 : i32
    return %c0_i32, %c0_i32_0 : i32, i32
  }
}

</mosaic_0001>

<bundles_post_ra>
// kernel: stage1_discriminator_forward.4
= control target key start
LH: loop header
LB: loop body
LE: loop exit
PB: predicated region body
PF: predicated region fallthrough
CT: control target
= control target key end

     0   :  { %v927_v3 = vmov 0   ;;  %vm350_vm0 = vcmask 392192   ;;  %s1284_s1 = inlined_call_operand.vmem [shape: f32[48,2048], index: 1, kind: input, shape index: {}]   ;;  %s1285_s0 = inlined_call_operand.vmem [shape: f32[8,48], index: 0, kind: input, shape index: {}]   ;;  %s1286_s2 = inlined_call_operand.vmem [shape: bf16[8,2048], index: 2, kind: output, shape index: {}]  }
   0x1   :  { %v13_v0 = vld [vmem:[%s1284_s1 + $0x8] sm:$0xff]  ;;  %v15_v2 = vld [vmem:[%s1284_s1 + $0x18] sm:$0xff]  ;;  %386 = vmatprep.mubr.bf16.mxu0 %v927_v3  ;;  %427 = vmatprep.mubr.bf16.mxu1 %v927_v3  ;;  %v12_v8 = vld [vmem:[%s1284_s1] sm:$0xff] }
   0x2   :  { %v29_v1 = vld [vmem:[%s1284_s1 + $0x88] sm:$0xff]  ;;  %v807_v4 = vclamps-f32 %v13_v0, 1.0  ;;  %v31_v6 = vld [vmem:[%s1284_s1 + $0x98] sm:$0xff]  ;;  %v809_v7 = vclamps-f32 %v15_v2, 1.0  ;;  %v28_v9 = vld [vmem:[%s1284_s1 + $0x80] sm:$0xff]  ;;  %v806_v11 = vclamps-f32 %v12_v8, 1.0 }
   0x3   :  { %v823_v5 = vclamps-f32 %v29_v1, 1.0  ;;  %v825_v10 = vclamps-f32 %v31_v6, 1.0  ;;  %v822_v12 = vclamps-f32 %v28_v9, 1.0  ;;  %v14_v13 = vld [vmem:[%s1284_s1 + $0x10] sm:$0xff]  ;;  %v45_v15 = vld [vmem:[%s1284_s1 + $0x108] sm:$0xff]  ;;  %v47_v21 = vld [vmem:[%s1284_s1 + $0x118] sm:$0xff] }
   0x4   :  { %v30_v14 = vld [vmem:[%s1284_s1 + $0x90] sm:$0xff]  ;;  %v808_v17 = vclamps-f32 %v14_v13, 1.0  ;;  %v61_v19 = vld [vmem:[%s1284_s1 + $0x188] sm:$0xff]  ;;  %v839_v20 = vclamps-f32 %v45_v15, 1.0  ;;  %v63_v22 = vld [vmem:[%s1284_s1 + $0x198] sm:$0xff]  ;;  %v841_v26 = vclamps-f32 %v47_v21, 1.0 }
   0x5   :  { %v303_v16 = vpack.c.bf16 %v823_v5, %v807_v4  ;;  %v824_v18 = vclamps-f32 %v30_v14, 1.0  ;;  %v305_v23 = vpack.c.bf16 %v825_v10, %v809_v7  ;;  %v302_v24 = vpack.c.bf16 %v822_v12, %v806_v11  ;;  %v44_v27 = vld [vmem:[%s1284_s1 + $0x100] sm:$0xff]  ;;  %v46_v29 = vld [vmem:[%s1284_s1 + $0x110] sm:$0xff]  ;;  %v77_v35 = vld [vmem:[%s1284_s1 + $0x208] sm:$0xff] }
   0x6   :  { %v855_v25 = vclamps-f32 %v61_v19, 1.0  ;;  %v60_v28 = vld [vmem:[%s1284_s1 + $0x180] sm:$0xff]  ;;  %v857_v31 = vclamps-f32 %v63_v22, 1.0  ;;  %v838_v32 = vclamps-f32 %v44_v27, 1.0  ;;  %v62_v34 = vld [vmem:[%s1284_s1 + $0x190] sm:$0xff]  ;;  %v93_v36 = vld [vmem:[%s1284_s1 + $0x288] sm:$0xff] }
   0x7   :  { %354 = vmatprep.subr.bf16.mxu0 %v303_v16  ;;  %v304_v30 = vpack.c.bf16 %v824_v18, %v808_v17  ;;  %v854_v33 = vclamps-f32 %v60_v28, 1.0  ;;  %395 = vmatprep.subr.bf16.mxu1 %v305_v23  ;;  %v840_v38 = vclamps-f32 %v46_v29, 1.0  ;;  %v856_v39 = vclamps-f32 %v62_v34, 1.0  ;;  %v79_v41 = vld [vmem:[%s1284_s1 + $0x218] sm:$0xff]  ;;  %v76_v43 = vld [vmem:[%s1284_s1 + $0x200] sm:$0xff]  ;;  %v78_v49 = vld [vmem:[%s1284_s1 + $0x210] sm:$0xff] }
   0x8   :  { %355 = vmatpush1.bf16.msra.mxu0 %v302_v24  ;;  %v319_v37 = vpack.c.bf16 %v855_v25, %v839_v20  ;;  %v871_v40 = vclamps-f32 %v77_v35, 1.0  ;;  %v95_v42 = vld [vmem:[%s1284_s1 + $0x298] sm:$0xff]  ;;  %v321_v44 = vpack.c.bf16 %v857_v31, %v841_v26  ;;  %v887_v46 = vclamps-f32 %v93_v36, 1.0  ;;  %v92_v48 = vld [vmem:[%s1284_s1 + $0x280] sm:$0xff]  ;;  %v94_v50 = vld [vmem:[%s1284_s1 + $0x290] sm:$0xff] }
   0x9   :  { %396 = vmatpush1.bf16.msra.mxu1 %v304_v30  ;;  %v318_v45 = vpack.c.bf16 %v854_v33, %v838_v32  ;;  %v873_v47 = vclamps-f32 %v79_v41, 1.0  ;;  %v320_v51 = vpack.c.bf16 %v856_v39, %v840_v38  ;;  %v889_v52 = vclamps-f32 %v95_v42, 1.0  ;;  %v300_v55 = vld [vmem:[%s1285_s0] sm:$0xff]  ;;  %v17_v56 = vld [vmem:[%s1284_s1 + $0x28] sm:$0xff]  ;;  %v19_v62 = vld [vmem:[%s1284_s1 + $0x38] sm:$0xff] }
   0xa   :  { %356 = vmatprep.subr.bf16.mxu0 %v319_v37  ;;  %v870_v53 = vclamps-f32 %v76_v43, 1.0  ;;  %v886_v54 = vclamps-f32 %v92_v48, 1.0  ;;  %v33_v57 = vld [vmem:[%s1284_s1 + $0xa8] sm:$0xff]  ;;  %397 = vmatprep.subr.bf16.mxu1 %v321_v44  ;;  %v335_v58 = vpack.c.bf16 %v887_v46, %v871_v40  ;;  %v872_v59 = vclamps-f32 %v78_v49, 1.0  ;;  %v35_v63 = vld [vmem:[%s1284_s1 + $0xb8] sm:$0xff]  ;;  %v16_v0 = vld [vmem:[%s1284_s1 + $0x20] sm:$0xff] }
   0xb   :  { %v888_v60 = vclamps-f32 %v94_v50, 1.0  ;;  %v1026_v61 = vpack.c.bf16 %v300_v55, %v300_v55  ;;  %v337_v1 = vpack.c.bf16 %v889_v52, %v873_v47  ;;  %v811_v4 = vclamps-f32 %v17_v56, 1.0  ;;  %v32_v6 = vld [vmem:[%s1284_s1 + $0xa0] sm:$0xff]  ;;  %v18_v7 = vld [vmem:[%s1284_s1 + $0x30] sm:$0xff]  ;;  %v49_v13 = vld [vmem:[%s1284_s1 + $0x128] sm:$0xff] }
   0xc   :  { %357 = vmatpush1.bf16.msra.mxu0 %v318_v45  ;;  %v334_v2 = vpack.c.bf16 %v886_v54, %v870_v53  ;;  %v827_v5 = vclamps-f32 %v33_v57, 1.0  ;;  %v34_v8 = vld [vmem:[%s1284_s1 + $0xb0] sm:$0xff]  ;;  %v813_v10 = vclamps-f32 %v19_v62, 1.0  ;;  %v829_v11 = vclamps-f32 %v35_v63, 1.0  ;;  %v65_v14 = vld [vmem:[%s1284_s1 + $0x1a8] sm:$0xff]  ;;  %v51_v15 = vld [vmem:[%s1284_s1 + $0x138] sm:$0xff] }
   0xd   :  { %398 = vmatpush1.bf16.msra.mxu1 %v320_v51  ;;  %358 = vmatprep.subr.bf16.mxu0 %v335_v58  ;;  %v336_v9 = vpack.c.bf16 %v888_v60, %v872_v59  ;;  %v810_v12 = vclamps-f32 %v16_v0, 1.0  ;;  %v826_v17 = vclamps-f32 %v32_v6, 1.0  ;;  %v812_v18 = vclamps-f32 %v18_v7, 1.0  ;;  %v67_v20 = vld [vmem:[%s1284_s1 + $0x1b8] sm:$0xff]  ;;  %v48_v21 = vld [vmem:[%s1284_s1 + $0x120] sm:$0xff]  ;;  %v50_v27 = vld [vmem:[%s1284_s1 + $0x130] sm:$0xff] }
   0xe   :  { %399 = vmatprep.subr.bf16.mxu1 %v337_v1  ;;  %v307_v16 = vpack.c.bf16 %v827_v5, %v811_v4  ;;  %v828_v19 = vclamps-f32 %v34_v8, 1.0  ;;  %v64_v22 = vld [vmem:[%s1284_s1 + $0x1a0] sm:$0xff]  ;;  %v309_v23 = vpack.c.bf16 %v829_v11, %v813_v10  ;;  %v843_v24 = vclamps-f32 %v49_v13, 1.0  ;;  %v66_v28 = vld [vmem:[%s1284_s1 + $0x1b0] sm:$0xff]  ;;  %v81_v29 = vld [vmem:[%s1284_s1 + $0x228] sm:$0xff] }
   0xf   :  { %v859_v25 = vclamps-f32 %v65_v14, 1.0  ;;  %v845_v26 = vclamps-f32 %v51_v15, 1.0  ;;  %v306_v30 = vpack.c.bf16 %v826_v17, %v810_v12  ;;  %v861_v32 = vclamps-f32 %v67_v20, 1.0  ;;  %v97_v34 = vld [vmem:[%s1284_s1 + $0x2a8] sm:$0xff]  ;;  %v83_v35 = vld [vmem:[%s1284_s1 + $0x238] sm:$0xff]  ;;  %v80_v41 = vld [vmem:[%s1284_s1 + $0x220] sm:$0xff] }
  0x10   :  { %359 = vmatpush1.bf16.msra.mxu0 %v334_v2  ;;  %v308_v31 = vpack.c.bf16 %v828_v19, %v812_v18  ;;  %v842_v33 = vclamps-f32 %v48_v21, 1.0  ;;  %v99_v36 = vld [vmem:[%s1284_s1 + $0x2b8] sm:$0xff]  ;;  %v858_v38 = vclamps-f32 %v64_v22, 1.0  ;;  %v844_v39 = vclamps-f32 %v50_v27, 1.0  ;;  %v96_v42 = vld [vmem:[%s1284_s1 + $0x2a0] sm:$0xff]  ;;  %v82_v43 = vld [vmem:[%s1284_s1 + $0x230] sm:$0xff] }
  0x11   :  { %400 = vmatpush1.bf16.msra.mxu1 %v336_v9  ;;  %436 = vmatprep.subr.bf16.mxu0 %v307_v16  ;;  %v323_v37 = vpack.c.bf16 %v859_v25, %v843_v24  ;;  %v860_v40 = vclamps-f32 %v66_v28, 1.0  ;;  %v325_v44 = vpack.c.bf16 %v861_v32, %v845_v26  ;;  %v875_v45 = vclamps-f32 %v81_v29, 1.0  ;;  %v98_v48 = vld [vmem:[%s1284_s1 + $0x2b0] sm:$0xff]  ;;  %v21_v49 = vld [vmem:[%s1284_s1 + $0x48] sm:$0xff]  ;;  %v23_v53 = vld [vmem:[%s1284_s1 + $0x58] sm:$0xff] }
  0x12   :  { %477 = vmatprep.subr.bf16.mxu1 %v309_v23  ;;  %v891_v46 = vclamps-f32 %v97_v34, 1.0  ;;  %v877_v47 = vclamps-f32 %v83_v35, 1.0  ;;  %v37_v50 = vld [vmem:[%s1284_s1 + $0xc8] sm:$0xff]  ;;  %v322_v51 = vpack.c.bf16 %v858_v38, %v842_v33  ;;  %v893_v52 = vclamps-f32 %v99_v36, 1.0  ;;  %v39_v54 = vld [vmem:[%s1284_s1 + $0xd8] sm:$0xff]  ;;  %v20_v59 = vld [vmem:[%s1284_s1 + $0x40] sm:$0xff] }
  0x13   :  { %902 = vmatmul.mubr.msk.bf16.vlgmr.msra.gmra.mrb[0].mxu0 %vm350_vm0, %v1026_v61  ;;  %v874_v55 = vclamps-f32 %v80_v41, 1.0  ;;  %v890_v56 = vclamps-f32 %v96_v42, 1.0  ;;  %v876_v57 = vclamps-f32 %v82_v43, 1.0  ;;  %v892_v58 = vclamps-f32 %v98_v48, 1.0  ;;  %v36_v60 = vld [vmem:[%s1284_s1 + $0xc0] sm:$0xff]  ;;  %v22_v2 = vld [vmem:[%s1284_s1 + $0x50] sm:$0xff] }
  0x14   :  { %903 = vmatmul.mubr.msk.bf16.vlgmr.msra.gmra.mrb[0].mxu1 %vm350_vm0, %v1026_v61  ;;  %437 = vmatpush1.bf16.msra.mxu0 %v306_v30  ;;  %v324_v62 = vpack.c.bf16 %v860_v40, %v844_v39  ;;  %v339_v63 = vpack.c.bf16 %v891_v46, %v875_v45  ;;  %v815_v0 = vclamps-f32 %v21_v49, 1.0  ;;  %v831_v1 = vclamps-f32 %v37_v50, 1.0  ;;  %v38_v7 = vld [vmem:[%s1284_s1 + $0xd0] sm:$0xff]  ;;  %v53_v8 = vld [vmem:[%s1284_s1 + $0x148] sm:$0xff]  ;;  %v55_v12 = vld [vmem:[%s1284_s1 + $0x158] sm:$0xff] }
  0x15   :  { %478 = vmatpush1.bf16.msra.mxu1 %v308_v31  ;;  %438 = vmatprep.subr.bf16.mxu0 %v323_v37  ;;  %v341_v4 = vpack.c.bf16 %v893_v52, %v877_v47  ;;  %v817_v5 = vclamps-f32 %v23_v53, 1.0  ;;  %v833_v6 = vclamps-f32 %v39_v54, 1.0  ;;  %v69_v9 = vld [vmem:[%s1284_s1 + $0x1c8] sm:$0xff]  ;;  %v814_v10 = vclamps-f32 %v20_v59, 1.0  ;;  %v71_v13 = vld [vmem:[%s1284_s1 + $0x1d8] sm:$0xff]  ;;  %v52_v17 = vld [vmem:[%s1284_s1 + $0x140] sm:$0xff] }
  0x16   :  { %479 = vmatprep.subr.bf16.mxu1 %v325_v44  ;;  %468 = vmatprep.mubr.bf16.mxu0 %v927_v3  ;;  %v830_v11 = vclamps-f32 %v36_v60, 1.0  ;;  %v338_v14 = vpack.c.bf16 %v890_v56, %v874_v55  ;;  %v340_v15 = vpack.c.bf16 %v892_v58, %v876_v57  ;;  %v816_v16 = vclamps-f32 %v22_v2, 1.0  ;;  %v68_v18 = vld [vmem:[%s1284_s1 + $0x1c0] sm:$0xff]  ;;  %v54_v19 = vld [vmem:[%s1284_s1 + $0x150] sm:$0xff]  ;;  %v85_v25 = vld [vmem:[%s1284_s1 + $0x248] sm:$0xff] }
  0x17   :  { %509 = vmatprep.mubr.bf16.mxu1 %v927_v3  ;;  %v311_v20 = vpack.c.bf16 %v831_v1, %v815_v0  ;;  %v832_v21 = vclamps-f32 %v38_v7, 1.0  ;;  %v847_v22 = vclamps-f32 %v53_v8, 1.0  ;;  %v863_v23 = vclamps-f32 %v69_v9, 1.0  ;;  %v70_v24 = vld [vmem:[%s1284_s1 + $0x1d0] sm:$0xff]  ;;  %v101_v26 = vld [vmem:[%s1284_s1 + $0x2c8] sm:$0xff]  ;;  %v87_v33 = vld [vmem:[%s1284_s1 + $0x258] sm:$0xff] }
  0x18   :  { %439 = vmatpush1.bf16.msra.mxu0 %v322_v51  ;;  %v313_v27 = vpack.c.bf16 %v833_v6, %v817_v5  ;;  %v849_v28 = vclamps-f32 %v55_v12, 1.0  ;;  %v865_v29 = vclamps-f32 %v71_v13, 1.0  ;;  %v310_v30 = vpack.c.bf16 %v830_v11, %v814_v10  ;;  %v103_v34 = vld [vmem:[%s1284_s1 + $0x2d8] sm:$0xff]  ;;  %v84_v39 = vld [vmem:[%s1284_s1 + $0x240] sm:$0xff]  ;;  %v86_v43 = vld [vmem:[%s1284_s1 + $0x250] sm:$0xff] }
  0x19   :  { %480 = vmatpush1.bf16.msra.mxu1 %v324_v62  ;;  %440 = vmatprep.subr.bf16.mxu0 %v339_v63  ;;  %v846_v31 = vclamps-f32 %v52_v17, 1.0  ;;  %v862_v32 = vclamps-f32 %v68_v18, 1.0  ;;  %v848_v35 = vclamps-f32 %v54_v19, 1.0  ;;  %v864_v36 = vclamps-f32 %v70_v24, 1.0  ;;  %v100_v40 = vld [vmem:[%s1284_s1 + $0x2c0] sm:$0xff]  ;;  %v102_v47 = vld [vmem:[%s1284_s1 + $0x2d0] sm:$0xff] }
  0x1a   :  { %481 = vmatprep.subr.bf16.mxu1 %v341_v4  ;;  %v879_v37 = vclamps-f32 %v85_v25, 1.0  ;;  %v895_v38 = vclamps-f32 %v101_v26, 1.0  ;;  %v312_v41 = vpack.c.bf16 %v832_v21, %v816_v16  ;;  %v327_v42 = vpack.c.bf16 %v863_v23, %v847_v22  ;;  %v25_v48 = vld [vmem:[%s1284_s1 + $0x68] sm:$0xff]  ;;  %v27_v52 = vld [vmem:[%s1284_s1 + $0x78] sm:$0xff]  ;;  %v24_v54 = vld [vmem:[%s1284_s1 + $0x60] sm:$0xff] }
  0x1b   :  { %v329_v44 = vpack.c.bf16 %v865_v29, %v849_v28  ;;  %v881_v45 = vclamps-f32 %v87_v33, 1.0  ;;  %v897_v46 = vclamps-f32 %v103_v34, 1.0  ;;  %v41_v49 = vld [vmem:[%s1284_s1 + $0xe8] sm:$0xff]  ;;  %v878_v50 = vclamps-f32 %v84_v39, 1.0  ;;  %v43_v53 = vld [vmem:[%s1284_s1 + $0xf8] sm:$0xff]  ;;  %v40_v58 = vld [vmem:[%s1284_s1 + $0xe0] sm:$0xff] }
  0x1c   :  { %441 = vmatpush1.bf16.msra.mxu0 %v338_v14  ;;  %v894_v51 = vclamps-f32 %v100_v40, 1.0  ;;  %v326_v55 = vpack.c.bf16 %v862_v32, %v846_v31  ;;  %v328_v56 = vpack.c.bf16 %v864_v36, %v848_v35  ;;  %v343_v57 = vpack.c.bf16 %v895_v38, %v879_v37  ;;  %v26_v59 = vld [vmem:[%s1284_s1 + $0x70] sm:$0xff]  ;;  %v57_v2 = vld [vmem:[%s1284_s1 + $0x168] sm:$0xff]  ;;  %v59_v11 = vld [vmem:[%s1284_s1 + $0x178] sm:$0xff] }
  0x1d   :  { %482 = vmatpush1.bf16.msra.mxu1 %v340_v15  ;;  %518 = vmatprep.subr.bf16.mxu0 %v311_v20  ;;  %v42_v60 = vld [vmem:[%s1284_s1 + $0xf0] sm:$0xff]  ;;  %v880_v62 = vclamps-f32 %v86_v43, 1.0  ;;  %v896_v63 = vclamps-f32 %v102_v47, 1.0  ;;  %v819_v0 = vclamps-f32 %v25_v48, 1.0  ;;  %v835_v1 = vclamps-f32 %v41_v49, 1.0  ;;  %v73_v4 = vld [vmem:[%s1284_s1 + $0x1e8] sm:$0xff] }
  0x1e   :  { %559 = vmatprep.subr.bf16.mxu1 %v313_v27  ;;  %v345_v5 = vpack.c.bf16 %v897_v46, %v881_v45  ;;  %v821_v6 = vclamps-f32 %v27_v52, 1.0  ;;  %v837_v7 = vclamps-f32 %v43_v53, 1.0  ;;  %v342_v8 = vpack.c.bf16 %v894_v51, %v878_v50  ;;  %v75_v12 = vld [vmem:[%s1284_s1 + $0x1f8] sm:$0xff]  ;;  %v56_v19 = vld [vmem:[%s1284_s1 + $0x160] sm:$0xff]  ;;  %v58_v21 = vld [vmem:[%s1284_s1 + $0x170] sm:$0xff] }
  0x1f   :  { %904 = vmatmul.mubr.msk.bf16.vlgmr.msra.gmra.mrb[4].mxu0 %vm350_vm0, %v1026_v61  ;;  %v818_v9 = vclamps-f32 %v24_v54, 1.0  ;;  %v834_v10 = vclamps-f32 %v40_v58, 1.0  ;;  %v820_v13 = vclamps-f32 %v26_v59, 1.0  ;;  %v836_v14 = vclamps-f32 %v42_v60, 1.0  ;;  %v72_v20 = vld [vmem:[%s1284_s1 + $0x1e0] sm:$0xff]  ;;  %v74_v25 = vld [vmem:[%s1284_s1 + $0x1f0] sm:$0xff] }
  0x20   :  { %905 = vmatmul.mubr.msk.bf16.vlgmr.msra.gmra.mrb[4].mxu1 %vm350_vm0, %v1026_v61  ;;  %519 = vmatpush1.bf16.msra.mxu0 %v310_v30  ;;  %v851_v15 = vclamps-f32 %v57_v2, 1.0  ;;  %v867_v16 = vclamps-f32 %v73_v4, 1.0  ;;  %v344_v17 = vpack.c.bf16 %v896_v63, %v880_v62  ;;  %v315_v18 = vpack.c.bf16 %v835_v1, %v819_v0  ;;  %v89_v26 = vld [vmem:[%s1284_s1 + $0x268] sm:$0xff]  ;;  %v91_v29 = vld [vmem:[%s1284_s1 + $0x278] sm:$0xff]  ;;  %v88_v39 = vld [vmem:[%s1284_s1 + $0x260] sm:$0xff] }
  0x21   :  { %560 = vmatpush1.bf16.msra.mxu1 %v312_v41  ;;  %520 = vmatprep.subr.bf16.mxu0 %v327_v42  ;;  %v317_v22 = vpack.c.bf16 %v837_v7, %v821_v6  ;;  %v853_v23 = vclamps-f32 %v59_v11, 1.0  ;;  %v869_v24 = vclamps-f32 %v75_v12, 1.0  ;;  %v105_v27 = vld [vmem:[%s1284_s1 + $0x2e8] sm:$0xff]  ;;  %v314_v28 = vpack.c.bf16 %v834_v10, %v818_v9  ;;  %v107_v30 = vld [vmem:[%s1284_s1 + $0x2f8] sm:$0xff]  ;;  %v104_v40 = vld [vmem:[%s1284_s1 + $0x2e0] sm:$0xff] }
  0x22   :  { %561 = vmatprep.subr.bf16.mxu1 %v329_v44  ;;  %550 = vmatprep.mubr.bf16.mxu0 %v927_v3  ;;  %v316_v31 = vpack.c.bf16 %v836_v14, %v820_v13  ;;  %v331_v32 = vpack.c.bf16 %v867_v16, %v851_v15  ;;  %v850_v33 = vclamps-f32 %v56_v19, 1.0  ;;  %v866_v34 = vclamps-f32 %v72_v20, 1.0  ;;  %v90_v44 = vld [vmem:[%s1284_s1 + $0x270] sm:$0xff] }
  0x23   :  { %591 = vmatprep.mubr.bf16.mxu1 %v927_v3  ;;  %v852_v35 = vclamps-f32 %v58_v21, 1.0  ;;  %v868_v36 = vclamps-f32 %v74_v25, 1.0  ;;  %v883_v37 = vclamps-f32 %v89_v26, 1.0  ;;  %v899_v38 = vclamps-f32 %v105_v27, 1.0  ;;  %v106_v45 = vld [vmem:[%s1284_s1 + $0x2f0] sm:$0xff] }
  0x24   :  { %521 = vmatpush1.bf16.msra.mxu0 %v326_v55  ;;  %v333_v41 = vpack.c.bf16 %v869_v24, %v853_v23  ;;  %v885_v42 = vclamps-f32 %v91_v29, 1.0  ;;  %v901_v43 = vclamps-f32 %v107_v30, 1.0  ;;  %v330_v46 = vpack.c.bf16 %v866_v34, %v850_v33 }
  0x25   :  { %562 = vmatpush1.bf16.msra.mxu1 %v328_v56  ;;  %522 = vmatprep.subr.bf16.mxu0 %v343_v57  ;;  %v882_v47 = vclamps-f32 %v88_v39, 1.0  ;;  %v898_v48 = vclamps-f32 %v104_v40, 1.0  ;;  %v332_v49 = vpack.c.bf16 %v868_v36, %v852_v35  ;;  %v347_v50 = vpack.c.bf16 %v899_v38, %v883_v37 }
  0x26   :  { %563 = vmatprep.subr.bf16.mxu1 %v345_v5  ;;  %v884_v51 = vclamps-f32 %v90_v44, 1.0  ;;  %v900_v52 = vclamps-f32 %v106_v45, 1.0  ;;  %v349_v53 = vpack.c.bf16 %v901_v43, %v885_v42 }
  0x27   :  { %v346_v54 = vpack.c.bf16 %v898_v48, %v882_v47 }
  0x28   :  { %523 = vmatpush1.bf16.msra.mxu0 %v342_v8  ;;  %v348_v55 = vpack.c.bf16 %v900_v52, %v884_v51 }
  0x29   :  { %564 = vmatpush1.bf16.msra.mxu1 %v344_v17  ;;  %600 = vmatprep.subr.bf16.mxu0 %v315_v18 }
  0x2a   :  { %641 = vmatprep.subr.bf16.mxu1 %v317_v22 }
  0x2b   :  { %906 = vmatmul.mubr.msk.bf16.vlgmr.msra.gmra.mrb[8].mxu0 %vm350_vm0, %v1026_v61 }
  0x2c   :  { %907 = vmatmul.mubr.msk.bf16.vlgmr.msra.gmra.mrb[8].mxu1 %vm350_vm0, %v1026_v61  ;;  %601 = vmatpush1.bf16.msra.mxu0 %v314_v28 }
  0x2d   :  { %642 = vmatpush1.bf16.msra.mxu1 %v316_v31  ;;  %602 = vmatprep.subr.bf16.mxu0 %v331_v32 }
  0x2e   :  { %643 = vmatprep.subr.bf16.mxu1 %v333_v41  ;;  %632 = vmatprep.mubr.bf16.mxu0 %v927_v3 }
  0x2f   :  { %673 = vmatprep.mubr.bf16.mxu1 %v927_v3 }
  0x30   :  { %603 = vmatpush1.bf16.msra.mxu0 %v330_v46 }
  0x31   :  { %644 = vmatpush1.bf16.msra.mxu1 %v332_v49  ;;  %604 = vmatprep.subr.bf16.mxu0 %v347_v50 }
  0x32   :  { %645 = vmatprep.subr.bf16.mxu1 %v349_v53 }
  0x34   :  { %605 = vmatpush1.bf16.msra.mxu0 %v346_v54 }
  0x35   :  { %646 = vmatpush1.bf16.msra.mxu1 %v348_v55 }
  0x37   :  { %908 = vmatmul.mubr.msk.bf16.vlgmr.msra.gmra.mrb[12].mxu0 %vm350_vm0, %v1026_v61 }
  0x38   :  { %909 = vmatmul.mubr.msk.bf16.vlgmr.msra.gmra.mrb[12].mxu1 %vm350_vm0, %v1026_v61 }
  0xe6   :  { %v388_v56 = vpop.f32.mrb[0].mxu0 }
  0xe7   :  { %vm682_vm1 = vcmp.ge.f32.partialorder %v388_v56, 0.0  ;;  %v698_v57 = vmul.f32 0.2, %v388_v56  ;;  %v429_v58 = vpop.f32.mrb[0].mxu1  ;;  %v390_v59 = vpop.f32.mrb[1].mxu0 }
  0xe8   :  { %vm684_vm2 = vcmp.ge.f32.partialorder %v429_v58, 0.0  ;;  %v700_v3 = vmul.f32 0.2, %v429_v58  ;;  %vm683_vm3 = vcmp.ge.f32.partialorder %v390_v59, 0.0  ;;  %v699_v60 = vmul.f32 0.2, %v390_v59 }
  0xe9   :  { %v714_v62 = vsel %vm682_vm1, %v388_v56, %v698_v57  ;;  %v431_v63 = vpop.f32.mrb[1].mxu1  ;;  %v392_v0 = vpop.f32.mrb[2].mxu0 }
  0xea   :  { %v716_v1 = vsel %vm684_vm2, %v429_v58, %v700_v3  ;;  %v715_v2 = vsel %vm683_vm3, %v390_v59, %v699_v60  ;;  %vm685_vm4 = vcmp.ge.f32.partialorder %v431_v63, 0.0  ;;  %v701_v4 = vmul.f32 0.2, %v431_v63  ;;  %v433_v5 = vpop.f32.mrb[2].mxu1  ;;  %v393_v6 = vpop.f32.mrb[3].mxu0 }
  0xeb   :  { %v918_v7 = vpack.c.bf16 %v715_v2, %v714_v62  ;;  %v434_v61 = vpop.f32.mrb[3].mxu1 }
  0xec   :  { %v717_v8 = vsel %vm685_vm4, %v431_v63, %v701_v4 }
  0xed   :  { %794 = vst [vmem:[%s1286_s2] sm:$0xff] %v918_v7  ;;  %v919_v9 = vpack.c.bf16 %v717_v8, %v716_v1 }
  0xef   :  { %795 = vst [vmem:[%s1286_s2 + $0x8] sm:$0xff] %v919_v9 }
  0xf2   :  { %v470_v10 = vpop.f32.mrb[4].mxu0 }
  0xf3   :  { %vm686_vm5 = vcmp.ge.f32.partialorder %v470_v10, 0.0  ;;  %v702_v11 = vmul.f32 0.2, %v470_v10  ;;  %v511_v12 = vpop.f32.mrb[4].mxu1  ;;  %v472_v13 = vpop.f32.mrb[5].mxu0 }
  0xf4   :  { %vm688_vm6 = vcmp.ge.f32.partialorder %v511_v12, 0.0  ;;  %v704_v14 = vmul.f32 0.2, %v511_v12  ;;  %vm687_vm7 = vcmp.ge.f32.partialorder %v472_v13, 0.0  ;;  %v703_v15 = vmul.f32 0.2, %v472_v13 }
  0xf5   :  { %v718_v16 = vsel %vm686_vm5, %v470_v10, %v702_v11  ;;  %v513_v17 = vpop.f32.mrb[5].mxu1  ;;  %v474_v18 = vpop.f32.mrb[6].mxu0 }
  0xf6   :  { %v720_v19 = vsel %vm688_vm6, %v511_v12, %v704_v14  ;;  %v719_v20 = vsel %vm687_vm7, %v472_v13, %v703_v15  ;;  %vm689_vm8 = vcmp.ge.f32.partialorder %v513_v17, 0.0  ;;  %v705_v21 = vmul.f32 0.2, %v513_v17  ;;  %v515_v22 = vpop.f32.mrb[6].mxu1  ;;  %v475_v23 = vpop.f32.mrb[7].mxu0 }
  0xf7   :  { %v920_v24 = vpack.c.bf16 %v719_v20, %v718_v16  ;;  %v516_v25 = vpop.f32.mrb[7].mxu1 }
  0xf8   :  { %v721_v26 = vsel %vm689_vm8, %v513_v17, %v705_v21 }
  0xf9   :  { %796 = vst [vmem:[%s1286_s2 + $0x10] sm:$0xff] %v920_v24  ;;  %v921_v27 = vpack.c.bf16 %v721_v26, %v720_v19 }
  0xfb   :  { %797 = vst [vmem:[%s1286_s2 + $0x18] sm:$0xff] %v921_v27 }
  0xfe   :  { %v552_v28 = vpop.f32.mrb[8].mxu0 }
  0xff   :  { %vm690_vm9 = vcmp.ge.f32.partialorder %v552_v28, 0.0  ;;  %v706_v29 = vmul.f32 0.2, %v552_v28  ;;  %v593_v30 = vpop.f32.mrb[8].mxu1  ;;  %v554_v31 = vpop.f32.mrb[9].mxu0 }
 0x100   :  { %vm692_vm10 = vcmp.ge.f32.partialorder %v593_v30, 0.0  ;;  %v708_v32 = vmul.f32 0.2, %v593_v30  ;;  %vm691_vm11 = vcmp.ge.f32.partialorder %v554_v31, 0.0  ;;  %v707_v33 = vmul.f32 0.2, %v554_v31 }
 0x101   :  { %v722_v34 = vsel %vm690_vm9, %v552_v28, %v706_v29  ;;  %v595_v35 = vpop.f32.mrb[9].mxu1  ;;  %v556_v36 = vpop.f32.mrb[10].mxu0 }
 0x102   :  { %v724_v37 = vsel %vm692_vm10, %v593_v30, %v708_v32  ;;  %v723_v38 = vsel %vm691_vm11, %v554_v31, %v707_v33  ;;  %vm693_vm12 = vcmp.ge.f32.partialorder %v595_v35, 0.0  ;;  %v709_v39 = vmul.f32 0.2, %v595_v35  ;;  %v597_v40 = vpop.f32.mrb[10].mxu1  ;;  %v557_v41 = vpop.f32.mrb[11].mxu0 }
 0x103   :  { %v922_v42 = vpack.c.bf16 %v723_v38, %v722_v34  ;;  %v598_v43 = vpop.f32.mrb[11].mxu1 }
 0x104   :  { %v725_v44 = vsel %vm693_vm12, %v595_v35, %v709_v39 }
 0x105   :  { %798 = vst [vmem:[%s1286_s2 + $0x20] sm:$0xff] %v922_v42  ;;  %v923_v45 = vpack.c.bf16 %v725_v44, %v724_v37 }
 0x107   :  { %799 = vst [vmem:[%s1286_s2 + $0x28] sm:$0xff] %v923_v45 }
 0x10a   :  { %v634_v46 = vpop.f32.mrb[12].mxu0 }
 0x10b   :  { %vm694_vm13 = vcmp.ge.f32.partialorder %v634_v46, 0.0  ;;  %v710_v47 = vmul.f32 0.2, %v634_v46  ;;  %v675_v48 = vpop.f32.mrb[12].mxu1  ;;  %v636_v49 = vpop.f32.mrb[13].mxu0 }
 0x10c   :  { %vm696_vm14 = vcmp.ge.f32.partialorder %v675_v48, 0.0  ;;  %v712_v50 = vmul.f32 0.2, %v675_v48  ;;  %vm695_vm15 = vcmp.ge.f32.partialorder %v636_v49, 0.0  ;;  %v711_v51 = vmul.f32 0.2, %v636_v49 }
 0x10d   :  { %v726_v52 = vsel %vm694_vm13, %v634_v46, %v710_v47  ;;  %v677_v53 = vpop.f32.mrb[13].mxu1  ;;  %v638_v54 = vpop.f32.mrb[14].mxu0 }
 0x10e   :  { %v728_v55 = vsel %vm696_vm14, %v675_v48, %v712_v50  ;;  %v727_v56 = vsel %vm695_vm15, %v636_v49, %v711_v51  ;;  %vm697_vm0 = vcmp.ge.f32.partialorder %v677_v53, 0.0  ;;  %v713_v57 = vmul.f32 0.2, %v677_v53  ;;  %v679_v58 = vpop.f32.mrb[14].mxu1  ;;  %v639_v59 = vpop.f32.mrb[15].mxu0 }
 0x10f   :  { %v924_v3 = vpack.c.bf16 %v727_v56, %v726_v52  ;;  %v680_v60 = vpop.f32.mrb[15].mxu1 }
 0x110   :  { %v729_v62 = vsel %vm697_vm0, %v677_v53, %v713_v57 }
 0x111   :  { %800 = vst [vmem:[%s1286_s2 + $0x30] sm:$0xff] %v924_v3  ;;  %v925_v63 = vpack.c.bf16 %v729_v62, %v728_v55 }
 0x113   :  { %801 = vst [vmem:[%s1286_s2 + $0x38] sm:$0xff] %v925_v63 }

// kernel: stage1_discriminator_forward.5
= control target key start
LH: loop header
LB: loop body
LE: loop exit
PB: predicated region body
PF: predicated region fallthrough
CT: control target
= control target key end

     0   :  { %v539_v1 = vmov 0   ;;  %v540_v38 = vmov 1   ;;  %s685_s1 = inlined_call_operand.vmem [shape: bf16[128,512], index: 1, kind: input, shape index: {}]   ;;  %s686_s0 = inlined_call_operand.vmem [shape: f32[16,128], index: 0, kind: input, shape index: {}]   ;;  %s687_s2 = inlined_call_operand.vmem [shape: f32[16,2], index: 2, kind: input, shape index: {}]   ;;  %s688_s3 = inlined_call_operand.vmem [shape: bf16[16,512], index: 3, kind: output, shape index: {}]  }
   0x1   :  { %v487_v0 = vld [vmem:[%s685_s1 + $0x4] ss:$16 sps:$4 sm:$0xff]   ;;  %242 = vmatprep.mubr.bf16.mxu0 %v539_v1  ;;  %285 = vmatprep.mubr.bf16.mxu1 %v539_v1  ;;  %v489_v2 = vld [vmem:[%s685_s1 + $0xc] ss:$16 sps:$4 sm:$0xff]   ;;  %v491_v3 = vld [vmem:[%s685_s1] ss:$16 sps:$4 sm:$0xff]  }
   0x2   :  { %484 = vset.pattern.permute.xlu1 %v539_v1  ;;  %483 = vset.pattern.permute.xlu0 %v539_v1  ;;  %v492_v4 = vld [vmem:[%s685_s1 + $0x8] ss:$16 sps:$4 sm:$0xff]   ;;  %v493_v5 = vld [vmem:[%s685_s1 + $0x24] ss:$16 sps:$4 sm:$0xff]   ;;  %v495_v6 = vld [vmem:[%s685_s1 + $0x2c] ss:$16 sps:$4 sm:$0xff]  }
   0x3   :  { %210 = vmatprep.subr.bf16.mxu0 %v487_v0  ;;  %253 = vmatprep.subr.bf16.mxu1 %v489_v2  ;;  %v497_v7 = vld [vmem:[%s685_s1 + $0x20] ss:$16 sps:$4 sm:$0xff]   ;;  %v498_v8 = vld [vmem:[%s685_s1 + $0x28] ss:$16 sps:$4 sm:$0xff]   ;;  %v499_v9 = vld [vmem:[%s685_s1 + $0x44] ss:$16 sps:$4 sm:$0xff]  }
   0x4   :  { %211 = vmatpush1.bf16.msra.mxu0 %v491_v3  ;;  %254 = vmatpush1.bf16.msra.mxu1 %v492_v4  ;;  %v501_v10 = vld [vmem:[%s685_s1 + $0x4c] ss:$16 sps:$4 sm:$0xff]   ;;  %v503_v11 = vld [vmem:[%s685_s1 + $0x40] ss:$16 sps:$4 sm:$0xff]   ;;  %v504_v12 = vld [vmem:[%s685_s1 + $0x48] ss:$16 sps:$4 sm:$0xff]  }
   0x5   :  { %212 = vmatprep.subr.bf16.mxu0 %v493_v5  ;;  %255 = vmatprep.subr.bf16.mxu1 %v495_v6  ;;  %v505_v13 = vld [vmem:[%s685_s1 + $0x64] ss:$16 sps:$4 sm:$0xff]   ;;  %v507_v14 = vld [vmem:[%s685_s1 + $0x6c] ss:$16 sps:$4 sm:$0xff]   ;;  %v509_v15 = vld [vmem:[%s685_s1 + $0x60] ss:$16 sps:$4 sm:$0xff]  }
   0x6   :  { %v510_v16 = vld [vmem:[%s685_s1 + $0x68] ss:$16 sps:$4 sm:$0xff]   ;;  %v511_v17 = vld [vmem:[%s685_s1 + $0x84] ss:$16 sps:$4 sm:$0xff]   ;;  %v513_v18 = vld [vmem:[%s685_s1 + $0x8c] ss:$16 sps:$4 sm:$0xff]  }
   0x7   :  { %v515_v19 = vld [vmem:[%s685_s1 + $0x80] ss:$16 sps:$4 sm:$0xff]   ;;  %v516_v20 = vld [vmem:[%s685_s1 + $0x88] ss:$16 sps:$4 sm:$0xff]   ;;  %v517_v21 = vld [vmem:[%s685_s1 + $0xa4] ss:$16 sps:$4 sm:$0xff]  }
   0x8   :  { %213 = vmatpush1.bf16.msra.mxu0 %v497_v7  ;;  %256 = vmatpush1.bf16.msra.mxu1 %v498_v8  ;;  %v519_v22 = vld [vmem:[%s685_s1 + $0xac] ss:$16 sps:$4 sm:$0xff]   ;;  %v521_v23 = vld [vmem:[%s685_s1 + $0xa0] ss:$16 sps:$4 sm:$0xff]   ;;  %v522_v24 = vld [vmem:[%s685_s1 + $0xa8] ss:$16 sps:$4 sm:$0xff]  }
   0x9   :  { %214 = vmatprep.subr.bf16.mxu0 %v499_v9  ;;  %257 = vmatprep.subr.bf16.mxu1 %v501_v10  ;;  %v523_v25 = vld [vmem:[%s685_s1 + $0xc4] ss:$16 sps:$4 sm:$0xff]   ;;  %v525_v26 = vld [vmem:[%s685_s1 + $0xcc] ss:$16 sps:$4 sm:$0xff]   ;;  %v527_v27 = vld [vmem:[%s685_s1 + $0xc0] ss:$16 sps:$4 sm:$0xff]  }
   0xa   :  { %v528_v28 = vld [vmem:[%s685_s1 + $0xc8] ss:$16 sps:$4 sm:$0xff]   ;;  %v529_v29 = vld [vmem:[%s685_s1 + $0xe4] ss:$16 sps:$4 sm:$0xff]   ;;  %v531_v30 = vld [vmem:[%s685_s1 + $0xec] ss:$16 sps:$4 sm:$0xff]  }
   0xb   :  { %v533_v31 = vld [vmem:[%s685_s1 + $0xe0] ss:$16 sps:$4 sm:$0xff]   ;;  %v534_v32 = vld [vmem:[%s685_s1 + $0xe8] ss:$16 sps:$4 sm:$0xff]  }
   0xc   :  { %215 = vmatpush1.bf16.msra.mxu0 %v503_v11  ;;  %258 = vmatpush1.bf16.msra.mxu1 %v504_v12  ;;  %v15_v33 = vld [vmem:[%s686_s0] sm:$0xff]  ;;  %v16_v34 = vld [vmem:[%s686_s0 + $0x8] sm:$0xff] }
   0xd   :  { %216 = vmatprep.subr.bf16.mxu0 %v505_v13  ;;  %259 = vmatprep.subr.bf16.mxu1 %v507_v14  ;;  %v17_v35 = vpack.c.bf16 %v16_v34, %v15_v33  ;;  %v338_v36 = vld [vmem:[%s687_s2 + $0x8] sm:$0xff]  ;;  %v337_v37 = vld [vmem:[%s687_s2] sm:$0xff] }
   0xe   :  { %358 = vperm.xlu1 %484, %v338_v36  }
  0x10   :  { %217 = vmatpush1.bf16.msra.mxu0 %v509_v15  ;;  %260 = vmatpush1.bf16.msra.mxu1 %v510_v16 }
  0x11   :  { %218 = vmatprep.subr.bf16.mxu0 %v511_v17  ;;  %261 = vmatprep.subr.bf16.mxu1 %v513_v18 }
  0x12   :  { %485 = vset.pattern.permute.xlu1 %v540_v38 }
  0x13   :  { %370 = vperm.xlu1 %485, %v337_v37  }
  0x14   :  { %219 = vmatpush1.bf16.msra.mxu0 %v515_v19  ;;  %262 = vmatpush1.bf16.msra.mxu1 %v516_v20 }
  0x15   :  { %220 = vmatprep.subr.bf16.mxu0 %v517_v21  ;;  %263 = vmatprep.subr.bf16.mxu1 %v519_v22 }
  0x18   :  { %221 = vmatpush1.bf16.msra.mxu0 %v521_v23  ;;  %264 = vmatpush1.bf16.msra.mxu1 %v522_v24 }
  0x19   :  { %222 = vmatprep.subr.bf16.mxu0 %v523_v25  ;;  %265 = vmatprep.subr.bf16.mxu1 %v525_v26 }
  0x1c   :  { %223 = vmatpush1.bf16.msra.mxu0 %v527_v27  ;;  %266 = vmatpush1.bf16.msra.mxu1 %v528_v28 }
  0x1d   :  { %224 = vmatprep.subr.bf16.mxu0 %v529_v29  ;;  %267 = vmatprep.subr.bf16.mxu1 %v531_v30 }
  0x20   :  { %225 = vmatpush1.bf16.msra.mxu0 %v533_v31  ;;  %268 = vmatpush1.bf16.msra.mxu1 %v534_v32 }
  0x23   :  { %243 = vmatmul.mubr.bf16.vlgmr.msra.gmra.mrb[0].mxu0 %v17_v35  ;;  %286 = vmatmul.mubr.bf16.vlgmr.msra.gmra.mrb[0].mxu1 %v17_v35 }
  0x8d   :  { %v359_v15 = vpop.permute.xlu1 %358 }
  0x92   :  { %v371_v16 = vpop.permute.xlu1 %370 }
  0xf6   :  { %v244_v39 = vpop.f32.mrb[0].mxu0  ;;  %v287_v40 = vpop.f32.mrb[0].mxu1 }
  0xf7   :  { %v246_v41 = vpop.f32.mrb[1].mxu0  ;;  %v289_v42 = vpop.f32.mrb[1].mxu1 }
  0xf8   :  { %v296_v43 = vadd.f32 %v246_v41, %v244_v39  ;;  %v248_v44 = vpop.f32.mrb[2].mxu0  ;;  %v291_v45 = vpop.f32.mrb[2].mxu1 }
  0xf9   :  { %v250_v46 = vpop.f32.mrb[3].mxu0  ;;  %v293_v47 = vpop.f32.mrb[3].mxu1 }
  0xfa   :  { %v301_v48 = vadd.f32 %v250_v46, %v248_v44  ;;  %v297_v49 = vadd.f32 %v296_v43, %v287_v40 }
  0xfc   :  { %v302_v50 = vadd.f32 %v301_v48, %v291_v45  ;;  %v298_v51 = vadd.f32 %v297_v49, %v289_v42 }
  0xfe   :  { %v303_v52 = vadd.f32 %v302_v50, %v293_v47  ;;  %299 = vadd.xlane.f32.xlu0 %v298_v51 }
 0x102   :  { %304 = vadd.xlane.f32.xlu0 %v303_v52 }
 0x118   :  { %353 = vperm.xlu0 %483, %v337_v37  }
 0x11c   :  { %486 = vset.pattern.permute.xlu0 %v540_v38 }
 0x18b   :  { %v300_v53 = vpop.xlane.xlu0 %299 }
 0x18c   :  { %v307_v54 = vmul.f32 0.001953125, %v300_v53 }
 0x18e   :  { %v309_v55 = vsub.f32 %v244_v39, %v307_v54  ;;  %v310_v56 = vsub.f32 %v246_v41, %v307_v54  ;;  %v311_v57 = vsub.f32 %v287_v40, %v307_v54  ;;  %v312_v59 = vsub.f32 %v289_v42, %v307_v54 }
 0x18f   :  { %v305_v58 = vpop.xlane.xlu0 %304 }
 0x190   :  { %v308_v60 = vmul.f32 0.001953125, %v305_v58  ;;  %v317_v61 = vmul.f32 %v309_v55, %v309_v55  ;;  %v318_v62 = vmul.f32 %v310_v56, %v310_v56  ;;  %v319_v63 = vmul.f32 %v311_v57, %v311_v57 }
 0x191   :  { %v320_v4 = vmul.f32 %v312_v59, %v312_v59 }
 0x192   :  { %v313_v0 = vsub.f32 %v248_v44, %v308_v60  ;;  %v314_v1 = vsub.f32 %v250_v46, %v308_v60  ;;  %v325_v2 = vadd.f32 %v318_v62, %v317_v61  ;;  %v315_v3 = vsub.f32 %v291_v45, %v308_v60 }
 0x193   :  { %v316_v6 = vsub.f32 %v293_v47, %v308_v60 }
 0x194   :  { %v326_v5 = vadd.f32 %v325_v2, %v319_v63  ;;  %v321_v7 = vmul.f32 %v313_v0, %v313_v0  ;;  %v322_v8 = vmul.f32 %v314_v1, %v314_v1  ;;  %v323_v10 = vmul.f32 %v315_v3, %v315_v3 }
 0x195   :  { %v324_v12 = vmul.f32 %v316_v6, %v316_v6 }
 0x196   :  { %v327_v9 = vadd.f32 %v326_v5, %v320_v4  ;;  %v330_v11 = vadd.f32 %v322_v8, %v321_v7 }
 0x197   :  { %v354_v24 = vpop.permute.xlu0 %353 }
 0x198   :  { %328 = vadd.xlane.f32.xlu1 %v327_v9  ;;  %v331_v13 = vadd.f32 %v330_v11, %v323_v10 }
 0x19a   :  { %v332_v14 = vadd.f32 %v331_v13, %v324_v12 }
 0x19c   :  { %333 = vadd.xlane.f32.xlu1 %v332_v14 }
 0x1ad   :  { %374 = vperm.xlu1 %485, %v338_v36  }
 0x225   :  { %v329_v17 = vpop.xlane.xlu1 %328 }
 0x226   :  { %v335_v18 = vmul.f32 0.001953125, %v329_v17 }
 0x228   :  { %v339_v19 = vadd.f32 1e-05, %v335_v18 }
 0x229   :  { %v334_v20 = vpop.xlane.xlu1 %333 }
 0x22a   :  { %535 = vrsqrt.f32 %v339_v19  ;;  %v336_v21 = vmul.f32 0.001953125, %v334_v20 }
 0x22c   :  { %v340_v22 = vadd.f32 1e-05, %v336_v21 }
 0x22d   :  { %v375_v46 = vpop.permute.xlu1 %374 }
 0x22e   :  { %537 = vrsqrt.f32 %v340_v22 }
 0x234   :  { %v536_v23 = vpop.eup %535 }
 0x235   :  { %v343_v25 = vmul.f32 %v536_v23, %v309_v55  ;;  %v344_v26 = vmul.f32 %v536_v23, %v310_v56  ;;  %v345_v27 = vmul.f32 %v536_v23, %v311_v57  ;;  %v346_v28 = vmul.f32 %v536_v23, %v312_v59 }
 0x237   :  { %v361_v29 = vmul.f32 %v354_v24, %v343_v25  ;;  %v362_v30 = vmul.f32 %v354_v24, %v344_v26  ;;  %v363_v31 = vmul.f32 %v354_v24, %v345_v27  ;;  %v364_v32 = vmul.f32 %v354_v24, %v346_v28 }
 0x238   :  { %v538_v33 = vpop.eup %537 }
 0x239   :  { %v347_v34 = vmul.f32 %v538_v33, %v313_v0  ;;  %v348_v35 = vmul.f32 %v538_v33, %v314_v1  ;;  %v349_v36 = vmul.f32 %v538_v33, %v315_v3  ;;  %v350_v37 = vmul.f32 %v538_v33, %v316_v6 }
 0x23a   :  { %v377_v38 = vadd.f32 %v371_v16, %v361_v29  ;;  %v378_v39 = vadd.f32 %v371_v16, %v362_v30  ;;  %v379_v40 = vadd.f32 %v371_v16, %v363_v31  ;;  %v380_v41 = vadd.f32 %v371_v16, %v364_v32 }
 0x23b   :  { %v365_v42 = vmul.f32 %v359_v15, %v347_v34  ;;  %v366_v43 = vmul.f32 %v359_v15, %v348_v35  ;;  %v367_v44 = vmul.f32 %v359_v15, %v349_v36  ;;  %v368_v45 = vmul.f32 %v359_v15, %v350_v37 }
 0x23c   :  { %vm385_vm0 = vcmp.ge.f32.partialorder %v377_v38, 0.0  ;;  %vm386_vm1 = vcmp.ge.f32.partialorder %v378_v39, 0.0  ;;  %vm387_vm2 = vcmp.ge.f32.partialorder %v379_v40, 0.0  ;;  %vm388_vm3 = vcmp.ge.f32.partialorder %v380_v41, 0.0 }
 0x23d   :  { %v381_v47 = vadd.f32 %v375_v46, %v365_v42  ;;  %v382_v48 = vadd.f32 %v375_v46, %v366_v43  ;;  %v383_v49 = vadd.f32 %v375_v46, %v367_v44  ;;  %v384_v50 = vadd.f32 %v375_v46, %v368_v45 }
 0x23e   :  { %v393_v51 = vmul.f32 0.2, %v377_v38  ;;  %v394_v52 = vmul.f32 0.2, %v378_v39  ;;  %v395_v53 = vmul.f32 0.2, %v379_v40 }
 0x23f   :  { %vm389_vm4 = vcmp.ge.f32.partialorder %v381_v47, 0.0  ;;  %vm390_vm5 = vcmp.ge.f32.partialorder %v382_v48, 0.0  ;;  %vm391_vm6 = vcmp.ge.f32.partialorder %v383_v49, 0.0  ;;  %vm392_vm7 = vcmp.ge.f32.partialorder %v384_v50, 0.0 }
 0x240   :  { %v397_v54 = vmul.f32 0.2, %v381_v47  ;;  %v398_v55 = vmul.f32 0.2, %v382_v48  ;;  %v399_v56 = vmul.f32 0.2, %v383_v49  ;;  %v401_v57 = vsel %vm385_vm0, %v377_v38, %v393_v51 }
 0x241   :  { %v400_v58 = vmul.f32 0.2, %v384_v50  ;;  %v396_v59 = vmul.f32 0.2, %v380_v41  ;;  %v402_v60 = vsel %vm386_vm1, %v378_v39, %v394_v52  ;;  %v403_v61 = vsel %vm387_vm2, %v379_v40, %v395_v53 }
 0x242   :  { %v405_v62 = vsel %vm389_vm4, %v381_v47, %v397_v54  ;;  %v406_v63 = vsel %vm390_vm5, %v382_v48, %v398_v55  ;;  %v407_v0 = vsel %vm391_vm6, %v383_v49, %v399_v56  ;;  %v477_v1 = vpack.c.bf16 %v402_v60, %v401_v57 }
 0x243   :  { %v408_v2 = vsel %vm392_vm7, %v384_v50, %v400_v58  ;;  %v479_v3 = vpack.c.bf16 %v406_v63, %v405_v62  ;;  %v404_v4 = vsel %vm388_vm3, %v380_v41, %v396_v59 }
 0x244   :  { %v480_v5 = vpack.c.bf16 %v408_v2, %v407_v0  ;;  %v478_v6 = vpack.c.bf16 %v404_v4, %v403_v61  ;;  %433 = vst [vmem:[%s688_s3] sm:$0xff] %v477_v1 }
 0x245   :  { %435 = vst [vmem:[%s688_s3 + $0x10] sm:$0xff] %v479_v3 }
 0x246   :  { %436 = vst [vmem:[%s688_s3 + $0x18] sm:$0xff] %v480_v5  ;;  %434 = vst [vmem:[%s688_s3 + $0x8] sm:$0xff] %v478_v6 }

// kernel: stage1_discriminator_forward.6
= control target key start
LH: loop header
LB: loop body
LE: loop exit
PB: predicated region body
PF: predicated region fallthrough
CT: control target
= control target key end

     0   :  { %v442_v28 = vmov 0   ;;  %v443_v45 = vmov 1   ;;  %s554_s1 = inlined_call_operand.vmem [shape: bf16[256,128], index: 1, kind: input, shape index: {}]   ;;  %s555_s0 = inlined_call_operand.vmem [shape: f32[32,256], index: 0, kind: input, shape index: {}]   ;;  %s556_s2 = inlined_call_operand.vmem [shape: f32[32,2], index: 2, kind: input, shape index: {}]   ;;  %s557_s3 = inlined_call_operand.vmem [shape: bf16[32,128], index: 3, kind: output, shape index: {}]  }
   0x1   :  { %v418_v0 = vld [vmem:[%s554_s1 + $0x40] sm:$0xff]   ;;  %v420_v2 = vld [vmem:[%s554_s1 + $0x48] sm:$0xff]   ;;  %v422_v4 = vld [vmem:[%s554_s1 + $0x50] sm:$0xff]   ;;  %415 = vset.pattern.permute.xlu1 %v442_v28  ;;  %414 = vset.pattern.permute.xlu0 %v442_v28 }
   0x2   :  { %v419_v1 = vld [vmem:[%s554_s1] sm:$0xff]   ;;  %368 = vmatprep.subr.bf16.mxu0 %v418_v0  ;;  %396 = vmatprep.subr.bf16.mxu1 %v418_v0  ;;  %v421_v3 = vld [vmem:[%s554_s1 + $0x8] sm:$0xff]   ;;  %v423_v5 = vld [vmem:[%s554_s1 + $0x10] sm:$0xff]  }
   0x3   :  { %369 = vmatpush3.bf16.msra.mxu0 %v419_v1  ;;  %404 = vmatpush3.bf16.msra.mxu1 %v419_v1  ;;  %v424_v6 = vld [vmem:[%s554_s1 + $0x58] sm:$0xff]   ;;  %v426_v8 = vld [vmem:[%s554_s1 + $0x60] sm:$0xff]   ;;  %v428_v10 = vld [vmem:[%s554_s1 + $0x68] sm:$0xff]  }
   0x4   :  { %370 = vmatprep.subr.bf16.mxu0 %v420_v2  ;;  %397 = vmatprep.subr.bf16.mxu1 %v420_v2  ;;  %v425_v7 = vld [vmem:[%s554_s1 + $0x18] sm:$0xff]   ;;  %v427_v9 = vld [vmem:[%s554_s1 + $0x20] sm:$0xff]   ;;  %v16_v11 = vld [vmem:[%s555_s0 + $0x8] sm:$0xff] }
   0x5   :  { %v18_v12 = vld [vmem:[%s555_s0 + $0x18] sm:$0xff]  ;;  %v20_v13 = vld [vmem:[%s555_s0 + $0x28] sm:$0xff]  ;;  %v430_v18 = vld [vmem:[%s554_s1 + $0x70] sm:$0xff]  }
   0x6   :  { %v24_v14 = vpack.c.bf16 %v18_v12, %v16_v11  ;;  %v22_v15 = vld [vmem:[%s555_s0 + $0x38] sm:$0xff]  ;;  %v429_v17 = vld [vmem:[%s554_s1 + $0x28] sm:$0xff]   ;;  %v431_v19 = vld [vmem:[%s554_s1 + $0x30] sm:$0xff]  }
   0x7   :  { %371 = vmatpush3.bf16.msra.mxu0 %v421_v3  ;;  %405 = vmatpush3.bf16.msra.mxu1 %v421_v3  ;;  %v26_v16 = vpack.c.bf16 %v22_v15, %v20_v13  ;;  %v432_v20 = vld [vmem:[%s554_s1 + $0x78] sm:$0xff]   ;;  %v15_v22 = vld [vmem:[%s555_s0] sm:$0xff]  ;;  %v17_v23 = vld [vmem:[%s555_s0 + $0x10] sm:$0xff] }
   0x8   :  { %372 = vmatprep.subr.bf16.mxu0 %v422_v4  ;;  %398 = vmatprep.subr.bf16.mxu1 %v422_v4  ;;  %v433_v21 = vld [vmem:[%s554_s1 + $0x38] sm:$0xff]   ;;  %v19_v24 = vld [vmem:[%s555_s0 + $0x20] sm:$0xff]  ;;  %v21_v25 = vld [vmem:[%s555_s0 + $0x30] sm:$0xff]  ;;  %v23_v26 = vpack.c.bf16 %v17_v23, %v15_v22 }
   0x9   :  { %187 = vmatprep.mubr.bf16.mxu0 %v24_v14  ;;  %195 = vmatprep.mubr.bf16.mxu1 %v26_v16  ;;  %v25_v27 = vpack.c.bf16 %v21_v25, %v19_v24  ;;  %v238_v41 = vld [vmem:[%s556_s2 + $0x8] sm:$0xff]  ;;  %v239_v42 = vld [vmem:[%s556_s2 + $0x10] sm:$0xff]  ;;  %v240_v43 = vld [vmem:[%s556_s2 + $0x18] sm:$0xff] }
   0xa   :  { %v237_v44 = vld [vmem:[%s556_s2] sm:$0xff] }
   0xb   :  { %373 = vmatpush3.bf16.msra.mxu0 %v423_v5  ;;  %406 = vmatpush3.bf16.msra.mxu1 %v423_v5 }
   0xc   :  { %374 = vmatprep.subr.bf16.mxu0 %v424_v6  ;;  %399 = vmatprep.subr.bf16.mxu1 %v424_v6 }
   0xf   :  { %375 = vmatpush3.bf16.msra.mxu0 %v425_v7  ;;  %407 = vmatpush3.bf16.msra.mxu1 %v425_v7 }
  0x10   :  { %376 = vmatprep.subr.bf16.mxu0 %v426_v8  ;;  %400 = vmatprep.subr.bf16.mxu1 %v426_v8 }
  0x13   :  { %377 = vmatpush3.bf16.msra.mxu0 %v427_v9  ;;  %408 = vmatpush3.bf16.msra.mxu1 %v427_v9 }
  0x14   :  { %378 = vmatprep.subr.bf16.mxu0 %v428_v10  ;;  %401 = vmatprep.subr.bf16.mxu1 %v428_v10 }
  0x17   :  { %379 = vmatpush3.bf16.msra.mxu0 %v429_v17  ;;  %409 = vmatpush3.bf16.msra.mxu1 %v429_v17 }
  0x18   :  { %380 = vmatprep.subr.bf16.mxu0 %v430_v18  ;;  %402 = vmatprep.subr.bf16.mxu1 %v430_v18 }
  0x1b   :  { %381 = vmatpush3.bf16.msra.mxu0 %v431_v19  ;;  %410 = vmatpush3.bf16.msra.mxu1 %v431_v19 }
  0x1c   :  { %382 = vmatprep.subr.bf16.mxu0 %v432_v20  ;;  %403 = vmatprep.subr.bf16.mxu1 %v432_v20 }
  0x1f   :  { %383 = vmatpush3.bf16.msra.mxu0 %v433_v21  ;;  %411 = vmatpush3.bf16.msra.mxu1 %v433_v21 }
  0x22   :  { %188 = vmatmul.mubr.bf16.vlgmr.msra.gmra.mrb[0].mxu0 %v23_v26  ;;  %196 = vmatmul.mubr.bf16.vlgmr.msra.gmra.mrb[0].mxu1 %v25_v27 }
  0xf5   :  { %v384_v29 = vpop.f32.mrb[0].mxu0  ;;  %v390_v30 = vpop.f32.mrb[0].mxu1 }
  0xf6   :  { %v385_v31 = vpop.f32.mrb[1].mxu0  ;;  %v391_v32 = vpop.f32.mrb[1].mxu1 }
  0xf7   :  { %v386_v33 = vadd.f32 %v385_v31, %v384_v29  ;;  %v392_v34 = vadd.f32 %v391_v32, %v390_v30  ;;  %v387_v35 = vpop.f32.mrb[2].mxu0  ;;  %v393_v36 = vpop.f32.mrb[2].mxu1 }
  0xf8   :  { %v388_v37 = vpop.f32.mrb[3].mxu0  ;;  %v394_v38 = vpop.f32.mrb[3].mxu1 }
  0xf9   :  { %v389_v39 = vadd.f32 %v388_v37, %v387_v35  ;;  %v395_v40 = vadd.f32 %v394_v38, %v393_v36  ;;  %208 = vadd.xlane.f32.xlu1 %v392_v34  ;;  %204 = vadd.xlane.f32.xlu0 %v386_v33 }
  0xfd   :  { %210 = vadd.xlane.f32.xlu1 %v395_v40  ;;  %206 = vadd.xlane.f32.xlu0 %v389_v39 }
 0x10e   :  { %260 = vperm.xlu1 %415, %v238_v41  }
 0x112   :  { %265 = vperm.xlu1 %415, %v239_v42  }
 0x116   :  { %270 = vperm.xlu1 %415, %v240_v43  }
 0x11a   :  { %416 = vset.pattern.permute.xlu1 %v443_v45 }
 0x11b   :  { %278 = vperm.xlu1 %416, %v237_v44  }
 0x11f   :  { %282 = vperm.xlu1 %416, %v238_v41  }
 0x123   :  { %286 = vperm.xlu1 %416, %v239_v42  }
 0x186   :  { %v209_v46 = vpop.xlane.xlu1 %208  ;;  %v205_v47 = vpop.xlane.xlu0 %204 }
 0x187   :  { %v215_v48 = vmul.f32 0.0078125, %v209_v46  ;;  %v213_v49 = vmul.f32 0.0078125, %v205_v47 }
 0x189   :  { %v217_v50 = vsub.f32 %v386_v33, %v213_v49  ;;  %v219_v53 = vsub.f32 %v392_v34, %v215_v48 }
 0x18a   :  { %v211_v51 = vpop.xlane.xlu1 %210  ;;  %v207_v52 = vpop.xlane.xlu0 %206 }
 0x18b   :  { %v216_v54 = vmul.f32 0.0078125, %v211_v51  ;;  %v214_v55 = vmul.f32 0.0078125, %v207_v52  ;;  %v221_v56 = vmul.f32 %v217_v50, %v217_v50  ;;  %v223_v59 = vmul.f32 %v219_v53, %v219_v53 }
 0x18d   :  { %v218_v57 = vsub.f32 %v389_v39, %v214_v55  ;;  %225 = vadd.xlane.f32.xlu0 %v221_v56  ;;  %v220_v58 = vsub.f32 %v395_v40, %v216_v54 }
 0x18e   :  { %v261_v62 = vpop.permute.xlu1 %260 }
 0x18f   :  { %v222_v60 = vmul.f32 %v218_v57, %v218_v57  ;;  %v224_v61 = vmul.f32 %v220_v58, %v220_v58 }
 0x191   :  { %229 = vadd.xlane.f32.xlu0 %v223_v59  ;;  %227 = vadd.xlane.f32.xlu1 %v222_v60 }
 0x192   :  { %v266_v63 = vpop.permute.xlu1 %265 }
 0x195   :  { %231 = vadd.xlane.f32.xlu1 %v224_v61 }
 0x196   :  { %v271_v0 = vpop.permute.xlu1 %270 }
 0x19a   :  { %v279_v1 = vpop.permute.xlu1 %278 }
 0x19e   :  { %v283_v2 = vpop.permute.xlu1 %282 }
 0x1a2   :  { %v287_v3 = vpop.permute.xlu1 %286 }
 0x1a6   :  { %290 = vperm.xlu1 %416, %v240_v43  }
 0x1a7   :  { %255 = vperm.xlu0 %414, %v237_v44  }
 0x1ab   :  { %417 = vset.pattern.permute.xlu0 %v443_v45 }
 0x21a   :  { %v226_v4 = vpop.xlane.xlu0 %225 }
 0x21b   :  { %v233_v5 = vmul.f32 0.0078125, %v226_v4 }
 0x21d   :  { %v241_v6 = vadd.f32 1e-05, %v233_v5 }
 0x21e   :  { %v228_v7 = vpop.xlane.xlu1 %227  ;;  %v230_v8 = vpop.xlane.xlu0 %229 }
 0x21f   :  { %434 = vrsqrt.f32 %v241_v6  ;;  %v234_v9 = vmul.f32 0.0078125, %v228_v7  ;;  %v235_v10 = vmul.f32 0.0078125, %v230_v8 }
 0x221   :  { %v242_v11 = vadd.f32 1e-05, %v234_v9  ;;  %v243_v12 = vadd.f32 1e-05, %v235_v10 }
 0x222   :  { %v232_v13 = vpop.xlane.xlu1 %231 }
 0x223   :  { %436 = vrsqrt.f32 %v242_v11  ;;  %v236_v14 = vmul.f32 0.0078125, %v232_v13 }
 0x224   :  { %438 = vrsqrt.f32 %v243_v12 }
 0x225   :  { %v244_v15 = vadd.f32 1e-05, %v236_v14 }
 0x226   :  { %v256_v17 = vpop.permute.xlu0 %255  ;;  %v291_v34 = vpop.permute.xlu1 %290 }
 0x227   :  { %440 = vrsqrt.f32 %v244_v15 }
 0x229   :  { %v435_v16 = vpop.eup %434 }
 0x22a   :  { %v249_v18 = vmul.f32 %v435_v16, %v217_v50 }
 0x22c   :  { %v273_v19 = vmul.f32 %v256_v17, %v249_v18 }
 0x22d   :  { %v437_v20 = vpop.eup %436 }
 0x22e   :  { %v439_v21 = vpop.eup %438  ;;  %v250_v22 = vmul.f32 %v437_v20, %v218_v57  ;;  %v293_v23 = vadd.f32 %v279_v1, %v273_v19 }
 0x22f   :  { %v251_v24 = vmul.f32 %v439_v21, %v219_v53 }
 0x230   :  { %v274_v25 = vmul.f32 %v261_v62, %v250_v22  ;;  %v301_v30 = vmul.f32 0.2, %v293_v23  ;;  %vm297_vm0 = vcmp.ge.f32.partialorder %v293_v23, 0.0 }
 0x231   :  { %v441_v26 = vpop.eup %440  ;;  %v275_v27 = vmul.f32 %v266_v63, %v251_v24 }
 0x232   :  { %v252_v28 = vmul.f32 %v441_v26, %v220_v58  ;;  %v294_v29 = vadd.f32 %v283_v2, %v274_v25  ;;  %v305_v38 = vsel %vm297_vm0, %v293_v23, %v301_v30 }
 0x233   :  { %v295_v31 = vadd.f32 %v287_v3, %v275_v27 }
 0x234   :  { %v276_v32 = vmul.f32 %v271_v0, %v252_v28  ;;  %vm298_vm1 = vcmp.ge.f32.partialorder %v294_v29, 0.0  ;;  %v302_v33 = vmul.f32 0.2, %v294_v29 }
 0x235   :  { %v303_v36 = vmul.f32 0.2, %v295_v31  ;;  %vm299_vm2 = vcmp.ge.f32.partialorder %v295_v31, 0.0 }
 0x236   :  { %v296_v35 = vadd.f32 %v291_v34, %v276_v32  ;;  %v306_v37 = vsel %vm298_vm1, %v294_v29, %v302_v33 }
 0x237   :  { %v360_v39 = vpack.c.bf16 %v306_v37, %v305_v38  ;;  %v307_v41 = vsel %vm299_vm2, %v295_v31, %v303_v36 }
 0x238   :  { %vm300_vm3 = vcmp.ge.f32.partialorder %v296_v35, 0.0  ;;  %v304_v40 = vmul.f32 0.2, %v296_v35 }
 0x239   :  { %361 = vst [vmem:[%s557_s3] sm:$0xff] %v360_v39  }
 0x23a   :  { %v308_v42 = vsel %vm300_vm3, %v296_v35, %v304_v40 }
 0x23b   :  { %v365_v43 = vpack.c.bf16 %v308_v42, %v307_v41 }
 0x23d   :  { %367 = vst [vmem:[%s557_s3 + $0x8] sm:$0xff] %v365_v43  }

// kernel: stage1_discriminator_forward.7
= control target key start
LH: loop header
LB: loop body
LE: loop exit
PB: predicated region body
PF: predicated region fallthrough
CT: control target
= control target key end

     0   :  { %s2332_s0 = inlined_call_operand.vmem [shape: f32[64,512], index: 0, kind: input, shape index: {}]   ;;  %s2333_s1 = inlined_call_operand.vmem [shape: bf16[512,32], index: 1, kind: input, shape index: {}]   ;;  %s2334_s2 = inlined_call_operand.vmem [shape: f32[64,2], index: 2, kind: input, shape index: {}]   ;;  %s2335_s3 = inlined_call_operand.vmem [shape: f32[64,32], index: 3, kind: input, shape index: {}]   ;;  %s2336_s4 = inlined_call_operand.vmem [shape: f32[32,2], index: 4, kind: input, shape index: {}]   ;;  %s2337_s5 = inlined_call_operand.vmem [shape: f32[64,2], index: 5, kind: input, shape index: {}]   ;;  %s2338_s6 = inlined_call_operand.vmem [shape: f32[64,32], index: 6, kind: input, shape index: {}]   ;;  %s2339_s7 = inlined_call_operand.vmem [shape: f32[64,1], index: 7, kind: input, shape index: {}]   ;;  %s2340_s8 = inlined_call_operand.vmem [shape: f32[32,2], index: 8, kind: input, shape index: {}]   ;;  %s2341_s9 = inlined_call_operand.hbm [shape: f32[1,2], index: 9, kind: output, shape index: {}]  }
   0x1   :  { %v1498_v0 = vld [vmem:[%s2333_s1 + $0x40] sm:$0xff]   ;;  %v1502_v4 = vld [vmem:[%s2333_s1 + $0x48] sm:$0xff]   ;;  %v1506_v8 = vld [vmem:[%s2333_s1 + $0x50] sm:$0xff]  }
   0x2   :  { %v1499_v1 = vld [vmem:[%s2333_s1 + $0xc0] sm:$0xff]   ;;  %1335 = vmatprep.subr.bf16.mxu0 %v1498_v0  ;;  %v1503_v5 = vld [vmem:[%s2333_s1 + $0xc8] sm:$0xff]   ;;  %v1507_v9 = vld [vmem:[%s2333_s1 + $0xd0] sm:$0xff]  }
   0x3   :  { %v1500_v2 = vld [vmem:[%s2333_s1] sm:$0xff]   ;;  %1375 = vmatprep.subr.bf16.mxu1 %v1499_v1  ;;  %v1504_v6 = vld [vmem:[%s2333_s1 + $0x8] sm:$0xff]   ;;  %v1508_v10 = vld [vmem:[%s2333_s1 + $0x10] sm:$0xff]  }
   0x4   :  { %v1501_v3 = vld [vmem:[%s2333_s1 + $0x80] sm:$0xff]   ;;  %1336 = vmatpush3.bf16.msra.mxu0 %v1500_v2  ;;  %v1505_v7 = vld [vmem:[%s2333_s1 + $0x88] sm:$0xff]   ;;  %v1509_v11 = vld [vmem:[%s2333_s1 + $0x90] sm:$0xff]  }
   0x5   :  { %1376 = vmatpush3.bf16.msra.mxu1 %v1501_v3  ;;  %1337 = vmatprep.subr.bf16.mxu0 %v1502_v4  ;;  %v1510_v12 = vld [vmem:[%s2333_s1 + $0x58] sm:$0xff]   ;;  %v1514_v16 = vld [vmem:[%s2333_s1 + $0x60] sm:$0xff]   ;;  %v1518_v20 = vld [vmem:[%s2333_s1 + $0x68] sm:$0xff]  }
   0x6   :  { %1377 = vmatprep.subr.bf16.mxu1 %v1503_v5  ;;  %v1511_v13 = vld [vmem:[%s2333_s1 + $0xd8] sm:$0xff]   ;;  %v1515_v17 = vld [vmem:[%s2333_s1 + $0xe0] sm:$0xff]   ;;  %v1519_v21 = vld [vmem:[%s2333_s1 + $0xe8] sm:$0xff]  }
   0x7   :  { %v1512_v14 = vld [vmem:[%s2333_s1 + $0x18] sm:$0xff]   ;;  %v1516_v18 = vld [vmem:[%s2333_s1 + $0x20] sm:$0xff]   ;;  %v1520_v22 = vld [vmem:[%s2333_s1 + $0x28] sm:$0xff]  }
   0x8   :  { %1338 = vmatpush3.bf16.msra.mxu0 %v1504_v6  ;;  %v1513_v15 = vld [vmem:[%s2333_s1 + $0x98] sm:$0xff]   ;;  %v1517_v19 = vld [vmem:[%s2333_s1 + $0xa0] sm:$0xff]   ;;  %v1521_v23 = vld [vmem:[%s2333_s1 + $0xa8] sm:$0xff]  }
   0x9   :  { %1378 = vmatpush3.bf16.msra.mxu1 %v1505_v7  ;;  %1339 = vmatprep.subr.bf16.mxu0 %v1506_v8  ;;  %v1522_v24 = vld [vmem:[%s2333_s1 + $0x70] sm:$0xff]   ;;  %v1526_v28 = vld [vmem:[%s2333_s1 + $0x78] sm:$0xff]   ;;  %v35_v32 = vld [vmem:[%s2332_s0 + $0x8] sm:$0xff] }
   0xa   :  { %1379 = vmatprep.subr.bf16.mxu1 %v1507_v9  ;;  %v1523_v25 = vld [vmem:[%s2333_s1 + $0xf0] sm:$0xff]   ;;  %v1527_v29 = vld [vmem:[%s2333_s1 + $0xf8] sm:$0xff]   ;;  %v39_v33 = vld [vmem:[%s2332_s0 + $0x28] sm:$0xff] }
   0xb   :  { %v1524_v26 = vld [vmem:[%s2333_s1 + $0x30] sm:$0xff]   ;;  %v1528_v30 = vld [vmem:[%s2333_s1 + $0x38] sm:$0xff]   ;;  %v67_v35 = vpack.c.bf16 %v39_v33, %v35_v32  ;;  %v34_v37 = vld [vmem:[%s2332_s0] sm:$0xff] }
   0xc   :  { %1340 = vmatpush3.bf16.msra.mxu0 %v1508_v10  ;;  %v1525_v27 = vld [vmem:[%s2333_s1 + $0xb0] sm:$0xff]   ;;  %v1529_v31 = vld [vmem:[%s2333_s1 + $0xb8] sm:$0xff]   ;;  %v38_v38 = vld [vmem:[%s2332_s0 + $0x20] sm:$0xff] }
   0xd   :  { %1380 = vmatpush3.bf16.msra.mxu1 %v1509_v11  ;;  %1341 = vmatprep.subr.bf16.mxu0 %v1510_v12  ;;  %v37_v34 = vld [vmem:[%s2332_s0 + $0x18] sm:$0xff]  ;;  %v66_v40 = vpack.c.bf16 %v38_v38, %v34_v37  ;;  %v36_v41 = vld [vmem:[%s2332_s0 + $0x10] sm:$0xff]  ;;  %v43_v43 = vld [vmem:[%s2332_s0 + $0x48] sm:$0xff] }
   0xe   :  { %1381 = vmatprep.subr.bf16.mxu1 %v1511_v13  ;;  %v41_v36 = vld [vmem:[%s2332_s0 + $0x38] sm:$0xff]  ;;  %v40_v42 = vld [vmem:[%s2332_s0 + $0x30] sm:$0xff]  ;;  %370 = vmatprep.mubr.bf16.mxu0 %v67_v35  ;;  %v47_v45 = vld [vmem:[%s2332_s0 + $0x68] sm:$0xff] }
   0xf   :  { %v69_v39 = vpack.c.bf16 %v41_v36, %v37_v34  ;;  %v68_v44 = vpack.c.bf16 %v40_v42, %v36_v41  ;;  %v45_v46 = vld [vmem:[%s2332_s0 + $0x58] sm:$0xff]  ;;  %v71_v48 = vpack.c.bf16 %v47_v45, %v43_v43  ;;  %v42_v50 = vld [vmem:[%s2332_s0 + $0x40] sm:$0xff]  ;;  %v44_v52 = vld [vmem:[%s2332_s0 + $0x50] sm:$0xff] }
  0x10   :  { %1342 = vmatpush3.bf16.msra.mxu0 %v1512_v14  ;;  %v49_v47 = vld [vmem:[%s2332_s0 + $0x78] sm:$0xff]  ;;  %v46_v51 = vld [vmem:[%s2332_s0 + $0x60] sm:$0xff]  ;;  %v48_v53 = vld [vmem:[%s2332_s0 + $0x70] sm:$0xff] }
  0x11   :  { %1382 = vmatpush3.bf16.msra.mxu1 %v1513_v15  ;;  %1343 = vmatprep.subr.bf16.mxu0 %v1514_v16  ;;  %v73_v49 = vpack.c.bf16 %v49_v47, %v45_v46  ;;  %v51_v54 = vld [vmem:[%s2332_s0 + $0x88] sm:$0xff]  ;;  %v53_v56 = vld [vmem:[%s2332_s0 + $0x98] sm:$0xff]  ;;  %v70_v58 = vpack.c.bf16 %v46_v51, %v42_v50  ;;  %v72_v59 = vpack.c.bf16 %v48_v53, %v44_v52 }
  0x12   :  { %1383 = vmatprep.subr.bf16.mxu1 %v1515_v17  ;;  %435 = vmatprep.mubr.bf16.mxu1 %v69_v39  ;;  %v55_v55 = vld [vmem:[%s2332_s0 + $0xa8] sm:$0xff]  ;;  %v57_v57 = vld [vmem:[%s2332_s0 + $0xb8] sm:$0xff] }
  0x13   :  { %v75_v60 = vpack.c.bf16 %v55_v55, %v51_v54  ;;  %v77_v61 = vpack.c.bf16 %v57_v57, %v53_v56 }
  0x14   :  { %1344 = vmatpush3.bf16.msra.mxu0 %v1516_v18 }
  0x15   :  { %1384 = vmatpush3.bf16.msra.mxu1 %v1517_v19  ;;  %1345 = vmatprep.subr.bf16.mxu0 %v1518_v20 }
  0x16   :  { %1385 = vmatprep.subr.bf16.mxu1 %v1519_v21 }
  0x18   :  { %1346 = vmatpush3.bf16.msra.mxu0 %v1520_v22 }
  0x19   :  { %1386 = vmatpush3.bf16.msra.mxu1 %v1521_v23  ;;  %1347 = vmatprep.subr.bf16.mxu0 %v1522_v24 }
  0x1a   :  { %1387 = vmatprep.subr.bf16.mxu1 %v1523_v25 }
  0x1c   :  { %1348 = vmatpush3.bf16.msra.mxu0 %v1524_v26 }
  0x1d   :  { %1388 = vmatpush3.bf16.msra.mxu1 %v1525_v27  ;;  %1349 = vmatprep.subr.bf16.mxu0 %v1526_v28 }
  0x1e   :  { %1389 = vmatprep.subr.bf16.mxu1 %v1527_v29 }
  0x20   :  { %1350 = vmatpush3.bf16.msra.mxu0 %v1528_v30 }
  0x21   :  { %1390 = vmatpush3.bf16.msra.mxu1 %v1529_v31 }
  0x23   :  { %371 = vmatmul.mubr.bf16.vlgmr.msra.gmra.mrb[0].mxu0 %v66_v40 }
  0x24   :  { %436 = vmatmul.mubr.bf16.vlgmr.msra.gmra.mrb[0].mxu1 %v68_v44  ;;  %378 = vmatprep.mubr.bf16.mxu0 %v71_v48 }
  0x25   :  { %443 = vmatprep.mubr.bf16.mxu1 %v73_v49 }
  0x26   :  { %14 = vsyncpa [#allocation3], 0  ;;  %v50_v62 = vld [vmem:[%s2332_s0 + $0x80] sm:$0xff]  ;;  %v52_v0 = vld [vmem:[%s2332_s0 + $0x90] sm:$0xff]  ;;  %vm468_vm0 = vcmask 261120   ;;  %v1586_v38 = vmov 0  }
  0x27   :  { %v54_v63 = vld [vmem:[%s2332_s0 + $0xa0] sm:$0xff]  ;;  %v56_v1 = vld [vmem:[%s2332_s0 + $0xb0] sm:$0xff]  ;;  %v59_v2 = vld [vmem:[%s2332_s0 + $0xc8] sm:$0xff]  ;;  %1477 = vset.pattern.permute.xlu1 %v1586_v38  ;;  %1476 = vset.pattern.permute.xlu0 %v1586_v38  ;;  %vm797_vm1 = vcmask 15360  }
  0x28   :  { %v63_v3 = vld [vmem:[%s2332_s0 + $0xe8] sm:$0xff]  ;;  %v61_v4 = vld [vmem:[%s2332_s0 + $0xd8] sm:$0xff]  ;;  %v74_v6 = vpack.c.bf16 %v54_v63, %v50_v62  ;;  %v76_v7 = vpack.c.bf16 %v56_v1, %v52_v0  ;;  %v58_v10 = vld [vmem:[%s2332_s0 + $0xc0] sm:$0xff] }
  0x29   :  { %v65_v5 = vld [vmem:[%s2332_s0 + $0xf8] sm:$0xff]  ;;  %v79_v8 = vpack.c.bf16 %v63_v3, %v59_v2  ;;  %v62_v11 = vld [vmem:[%s2332_s0 + $0xe0] sm:$0xff]  ;;  %v60_v12 = vld [vmem:[%s2332_s0 + $0xd0] sm:$0xff] }
  0x2a   :  { %v81_v9 = vpack.c.bf16 %v65_v5, %v61_v4  ;;  %v64_v13 = vld [vmem:[%s2332_s0 + $0xf0] sm:$0xff]  ;;  %v78_v14 = vpack.c.bf16 %v62_v11, %v58_v10  ;;  %v694_v16 = vld [vmem:[%s2336_s4] sm:$0xff]  ;;  %v695_v17 = vld [vmem:[%s2336_s4 + $0x8] sm:$0xff] }
  0x2b   :  { %379 = vmatmul.mubr.bf16.gmra.mrb[4].mxu0 %v70_v58  ;;  %v80_v15 = vpack.c.bf16 %v64_v13, %v60_v12  ;;  %v1319_v18 = vclamps-f32 %v694_v16, 10.0  ;;  %v1320_v19 = vclamps-f32 %v695_v17, 10.0  ;;  %v696_v21 = vld [vmem:[%s2336_s4 + $0x10] sm:$0xff]  ;;  %v697_v22 = vld [vmem:[%s2336_s4 + $0x18] sm:$0xff]  ;;  %v706_v26 = vld [vmem:[%s2335_s3] sm:$0xff] }
  0x2c   :  { %444 = vmatmul.mubr.bf16.gmra.mrb[4].mxu1 %v72_v59  ;;  %386 = vmatprep.mubr.bf16.mxu0 %v75_v60  ;;  %v1321_v23 = vclamps-f32 %v696_v21, 10.0  ;;  %v1322_v24 = vclamps-f32 %v697_v22, 10.0  ;;  %v707_v27 = vld [vmem:[%s2335_s3 + $0x8] sm:$0xff]  ;;  %v708_v29 = vld [vmem:[%s2335_s3 + $0x10] sm:$0xff]  ;;  %v709_v30 = vld [vmem:[%s2335_s3 + $0x18] sm:$0xff] }
  0x2d   :  { %451 = vmatprep.mubr.bf16.mxu1 %v77_v61  ;;  %v718_v20 = vpack.c.bf16 %v1320_v19, %v1319_v18  ;;  %v714_v28 = vpack.c.bf16 %v707_v27, %v706_v26  ;;  %v715_v31 = vpack.c.bf16 %v709_v30, %v708_v29  ;;  %v710_v32 = vld [vmem:[%s2335_s3 + $0x20] sm:$0xff]  ;;  %v711_v33 = vld [vmem:[%s2335_s3 + $0x28] sm:$0xff]  ;;  %v712_v35 = vld [vmem:[%s2335_s3 + $0x30] sm:$0xff] }
  0x2e   :  { %v719_v25 = vpack.c.bf16 %v1322_v24, %v1321_v23  ;;  %v716_v34 = vpack.c.bf16 %v711_v33, %v710_v32  ;;  %v713_v36 = vld [vmem:[%s2335_s3 + $0x38] sm:$0xff] }
  0x2f   :  { %1433 = vmatprep.subr.bf16.mxu0 %v718_v20  ;;  %v717_v37 = vpack.c.bf16 %v713_v36, %v712_v35 }
  0x30   :  { %1434 = vmatpush3.bf16.msra.mxu0 %v718_v20 }
  0x31   :  { %1435 = vmatprep.subr.bf16.mxu0 %v719_v25 }
  0x33   :  { %387 = vmatmul.mubr.bf16.gmra.mrb[8].mxu0 %v74_v6 }
  0x34   :  { %452 = vmatmul.mubr.bf16.gmra.mrb[8].mxu1 %v76_v7  ;;  %394 = vmatprep.mubr.bf16.mxu0 %v79_v8 }
  0x35   :  { %459 = vmatprep.mubr.bf16.mxu1 %v81_v9  ;;  %1436 = vmatpush3.bf16.msra.mxu0 %v719_v25 }
  0x3b   :  { %395 = vmatmul.mubr.bf16.gmra.mrb[12].mxu0 %v78_v14 }
  0x3c   :  { %460 = vmatmul.mubr.bf16.gmra.mrb[12].mxu1 %v80_v15  ;;  %1437 = vmatprep.mubr.msk.bf16.mxu0 %vm468_vm0, %v714_v28 }
  0x43   :  { %1438 = vmatmul.mubr.msk.bf16.vlgmr.msra.gmra.mrb[16].mxu0 %vm468_vm0, %v715_v31 }
  0x44   :  { %1441 = vmatprep.mubr.msk.bf16.mxu0 %vm468_vm0, %v716_v34 }
  0x4b   :  { %1442 = vmatmul.mubr.msk.bf16.gmra.mrb[20].mxu0 %vm468_vm0, %v717_v37 }
  0xf6   :  { %v1351_v39 = vpop.f32.mrb[0].mxu0 }
  0xf7   :  { %v1391_v40 = vpop.f32.mrb[0].mxu1  ;;  %v1352_v41 = vpop.f32.mrb[1].mxu0 }
  0xf8   :  { %v1353_v42 = vadd.f32 %v1352_v41, %v1351_v39  ;;  %v1392_v43 = vpop.f32.mrb[1].mxu1  ;;  %v1354_v44 = vpop.f32.mrb[2].mxu0  ;;  %v551_v39 = vld [vmem:[%s2334_s2 + $0x8] sm:$0xff]  ;;  %v1587_v41 = vmov 1  }
  0xf9   :  { %v1393_v45 = vadd.f32 %v1392_v43, %v1391_v40  ;;  %v1394_v46 = vpop.f32.mrb[2].mxu1  ;;  %v1355_v47 = vpop.f32.mrb[3].mxu0  ;;  %v550_v40 = vld [vmem:[%s2334_s2] sm:$0xff]  ;;  %v555_v43 = vld [vmem:[%s2334_s2 + $0x28] sm:$0xff] }
  0xfa   :  { %v1356_v48 = vadd.f32 %v1355_v47, %v1354_v44  ;;  %v1395_v49 = vpop.f32.mrb[3].mxu1  ;;  %v553_v44 = vld [vmem:[%s2334_s2 + $0x18] sm:$0xff] }
  0xfb   :  { %v1396_v50 = vadd.f32 %v1395_v49, %v1394_v46  ;;  %v1873_v51 = vadd.f32 %v1393_v45, %v1353_v42  ;;  %v552_v42 = vld [vmem:[%s2334_s2 + $0x10] sm:$0xff]  ;;  %v554_v45 = vld [vmem:[%s2334_s2 + $0x20] sm:$0xff] }
  0xfd   :  { %v469_v52 = vsel %vm468_vm0, %v1873_v51, 0.0  ;;  %v1877_v53 = vadd.f32 %v1396_v50, %v1356_v48 }
  0xfe   :  { %470 = vadd.xlane.f32.xlu0 %v469_v52  ;;  %v1357_v54 = vpop.f32.mrb[4].mxu0 }
  0xff   :  { %v1397_v55 = vpop.f32.mrb[4].mxu1  ;;  %v1358_v56 = vpop.f32.mrb[5].mxu0  ;;  %v472_v63 = vsel %vm468_vm0, %v1877_v53, 0.0 }
 0x100   :  { %v1359_v57 = vadd.f32 %v1358_v56, %v1357_v54  ;;  %v1398_v58 = vpop.f32.mrb[5].mxu1  ;;  %v1360_v59 = vpop.f32.mrb[6].mxu0 }
 0x101   :  { %v1399_v60 = vadd.f32 %v1398_v58, %v1397_v55  ;;  %v1400_v61 = vpop.f32.mrb[6].mxu1  ;;  %v1361_v62 = vpop.f32.mrb[7].mxu0  ;;  %v1952_v58 = vld [vmem:[%s2334_s2 + $0x38] sm:$0xff] }
 0x102   :  { %v1362_v0 = vadd.f32 %v1361_v62, %v1360_v59  ;;  %v1401_v1 = vpop.f32.mrb[7].mxu1  ;;  %473 = vadd.xlane.f32.xlu0 %v472_v63 }
 0x103   :  { %v1402_v2 = vadd.f32 %v1401_v1, %v1400_v61  ;;  %v1881_v3 = vadd.f32 %v1399_v60, %v1359_v57  ;;  %v556_v57 = vld [vmem:[%s2334_s2 + $0x30] sm:$0xff] }
 0x105   :  { %v475_v4 = vsel %vm468_vm0, %v1881_v3, 0.0  ;;  %v1885_v5 = vadd.f32 %v1402_v2, %v1362_v0 }
 0x106   :  { %476 = vadd.xlane.f32.xlu1 %v475_v4  ;;  %v1363_v6 = vpop.f32.mrb[8].mxu0 }
 0x107   :  { %v1403_v7 = vpop.f32.mrb[8].mxu1  ;;  %v1364_v8 = vpop.f32.mrb[9].mxu0  ;;  %v478_v15 = vsel %vm468_vm0, %v1885_v5, 0.0 }
 0x108   :  { %v1365_v9 = vadd.f32 %v1364_v8, %v1363_v6  ;;  %v1404_v10 = vpop.f32.mrb[9].mxu1  ;;  %v1366_v11 = vpop.f32.mrb[10].mxu0 }
 0x109   :  { %v1405_v12 = vadd.f32 %v1404_v10, %v1403_v7  ;;  %v1406_v13 = vpop.f32.mrb[10].mxu1  ;;  %v1367_v14 = vpop.f32.mrb[11].mxu0 }
 0x10a   :  { %v1368_v16 = vadd.f32 %v1367_v14, %v1366_v11  ;;  %v1407_v17 = vpop.f32.mrb[11].mxu1  ;;  %479 = vadd.xlane.f32.xlu1 %v478_v15 }
 0x10b   :  { %v1408_v18 = vadd.f32 %v1407_v17, %v1406_v13  ;;  %v1889_v19 = vadd.f32 %v1405_v12, %v1365_v9 }
 0x10d   :  { %v481_v20 = vsel %vm468_vm0, %v1889_v19, 0.0  ;;  %v1893_v21 = vadd.f32 %v1408_v18, %v1368_v16 }
 0x10e   :  { %482 = vadd.xlane.f32.xlu0 %v481_v20  ;;  %v1369_v22 = vpop.f32.mrb[12].mxu0 }
 0x10f   :  { %v1409_v23 = vpop.f32.mrb[12].mxu1  ;;  %v1370_v24 = vpop.f32.mrb[13].mxu0  ;;  %v484_v25 = vsel %vm468_vm0, %v1893_v21, 0.0 }
 0x110   :  { %v1371_v26 = vadd.f32 %v1370_v24, %v1369_v22  ;;  %v1410_v27 = vpop.f32.mrb[13].mxu1  ;;  %485 = vadd.xlane.f32.xlu1 %v484_v25  ;;  %v1372_v28 = vpop.f32.mrb[14].mxu0 }
 0x111   :  { %v1411_v29 = vadd.f32 %v1410_v27, %v1409_v23  ;;  %v1412_v30 = vpop.f32.mrb[14].mxu1  ;;  %v1373_v31 = vpop.f32.mrb[15].mxu0 }
 0x112   :  { %v1374_v32 = vadd.f32 %v1373_v31, %v1372_v28  ;;  %v1413_v33 = vpop.f32.mrb[15].mxu1  ;;  %v1039_v28 = vld [vmem:[%s2340_s8] sm:$0xff] }
 0x113   :  { %v1897_v34 = vadd.f32 %v1411_v29, %v1371_v26  ;;  %v1414_v35 = vadd.f32 %v1413_v33, %v1412_v30  ;;  %v1040_v29 = vld [vmem:[%s2340_s8 + $0x8] sm:$0xff]  ;;  %v1042_v33 = vld [vmem:[%s2340_s8 + $0x18] sm:$0xff] }
 0x114   :  { %v1465_v30 = vpack.c.bf16 %v1040_v29, %v1039_v28 }
 0x115   :  { %v487_v36 = vsel %vm468_vm0, %v1897_v34, 0.0  ;;  %v1901_v37 = vadd.f32 %v1414_v35, %v1374_v32  ;;  %v1041_v32 = vld [vmem:[%s2340_s8 + $0x10] sm:$0xff] }
 0x116   :  { %488 = vadd.xlane.f32.xlu0 %v487_v36  ;;  %v1928_v46 = vpop.f32.mrb[16].mxu0  ;;  %1466 = vmatprep.subr.bf16.mxu1 %v1465_v30 }
 0x117   :  { %v1930_v47 = vpop.f32.mrb[17].mxu0  ;;  %v490_v54 = vsel %vm468_vm0, %v1901_v37, 0.0  ;;  %1468 = vmatpush3.bf16.msra.mxu1 %v1465_v30 }
 0x118   :  { %v1932_v48 = vpop.f32.mrb[18].mxu0 }
 0x119   :  { %v1934_v49 = vpop.f32.mrb[19].mxu0 }
 0x11e   :  { %v1936_v50 = vpop.f32.mrb[20].mxu0 }
 0x11f   :  { %v1938_v52 = vpop.f32.mrb[21].mxu0 }
 0x120   :  { %v1942_v55 = vpop.f32.mrb[22].mxu0 }
 0x121   :  { %589 = vperm.xlu1 %1477, %v551_v39   ;;  %v1944_v56 = vpop.f32.mrb[23].mxu0 }
 0x125   :  { %1478 = vset.pattern.permute.xlu1 %v1587_v41 }
 0x126   :  { %631 = vperm.xlu1 %1478, %v550_v40  }
 0x12a   :  { %635 = vperm.xlu1 %1478, %v551_v39  }
 0x12c   :  { %584 = vperm.xlu0 %1476, %v550_v40  }
 0x12e   :  { %1479 = vset.pattern.permute.xlu1 %v1586_v38 }
 0x12f   :  { %594 = vperm.xlu1 %1479, %v552_v42  }
 0x130   :  { %609 = vperm.xlu0 %1476, %v555_v43  }
 0x133   :  { %599 = vperm.xlu1 %1479, %v553_v44  }
 0x134   :  { %1483 = vset.pattern.permute.xlu0 %v1587_v41 }
 0x135   :  { %651 = vperm.xlu0 %1483, %v555_v43  }
 0x137   :  { %1480 = vset.pattern.permute.xlu1 %v1587_v41 }
 0x138   :  { %639 = vperm.xlu1 %1480, %v552_v42   ;;  %v798_v42 = vsel %vm797_vm1, %v1930_v47, 0.0 }
 0x13c   :  { %643 = vperm.xlu1 %1480, %v553_v44   ;;  %v804_v44 = vsel %vm797_vm1, %v1928_v46, 0.0 }
 0x140   :  { %1481 = vset.pattern.permute.xlu1 %v1586_v38 }
 0x141   :  { %604 = vperm.xlu1 %1481, %v554_v45  }
 0x145   :  { %1482 = vset.pattern.permute.xlu1 %v1587_v41 }
 0x146   :  { %647 = vperm.xlu1 %1482, %v554_v45   ;;  %v807_v45 = vsel %vm797_vm1, %v1932_v48, 0.0 }
 0x14a   :  { %1484 = vset.pattern.permute.xlu1 %v1586_v38 }
 0x16a   :  { %491 = vadd.xlane.f32.xlu1 %v490_v54 }
 0x17b   :  { %614 = vperm.xlu1 %1484, %v556_v57  }
 0x17f   :  { %619 = vperm.xlu1 %1484, %v1952_v58  }
 0x183   :  { %1485 = vset.pattern.permute.xlu1 %v1587_v41 }
 0x18b   :  { %v471_v59 = vpop.xlane.xlu0 %470 }
 0x18c   :  { %v494_v60 = vmul.f32 0.03125, %v471_v59 }
 0x18e   :  { %v1957_v61 = vsub.f32 %v1873_v51, %v494_v60  ;;  %v819_v60 = vsel %vm797_vm1, %v1942_v55, 0.0 }
 0x18f   :  { %v474_v0 = vpop.xlane.xlu0 %473 }
 0x190   :  { %v510_v62 = vmul.f32 %v1957_v61, %v1957_v61  ;;  %v495_v4 = vmul.f32 0.03125, %v474_v0 }
 0x192   :  { %v518_v63 = vsel %vm468_vm0, %v510_v62, 0.0  ;;  %v1968_v51 = vsub.f32 %v1877_v53, %v495_v4 }
 0x193   :  { %v477_v1 = vpop.xlane.xlu1 %476  ;;  %519 = vadd.xlane.f32.xlu0 %v518_v63 }
 0x194   :  { %v496_v2 = vmul.f32 0.03125, %v477_v1  ;;  %v511_v16 = vmul.f32 %v1968_v51, %v1968_v51 }
 0x196   :  { %v1963_v6 = vsub.f32 %v1881_v3, %v496_v2  ;;  %v521_v18 = vsel %vm468_vm0, %v511_v16, 0.0 }
 0x197   :  { %v480_v7 = vpop.xlane.xlu1 %479 }
 0x198   :  { %v512_v8 = vmul.f32 %v1963_v6, %v1963_v6  ;;  %v497_v9 = vmul.f32 0.03125, %v480_v7  ;;  %v2048_v7 = vld [vmem:[%s2337_s5 + $0x8] sm:$0xff] }
 0x19a   :  { %v524_v10 = vsel %vm468_vm0, %v512_v8, 0.0  ;;  %v1972_v14 = vsub.f32 %v1885_v5, %v497_v9  ;;  %v1194_v8 = vld [vmem:[%s2339_s7 + $0x8] sm:$0xff] }
 0x19b   :  { %525 = vadd.xlane.f32.xlu0 %v524_v10  ;;  %v483_v11 = vpop.xlane.xlu0 %482  ;;  %v2064_v10 = vld [vmem:[%s2337_s5 + $0x20] sm:$0xff] }
 0x19c   :  { %v498_v12 = vmul.f32 0.03125, %v483_v11  ;;  %v513_v5 = vmul.f32 %v1972_v14, %v1972_v14 }
 0x19d   :  { %v486_v13 = vpop.xlane.xlu1 %485 }
 0x19e   :  { %v1975_v3 = vsub.f32 %v1889_v19, %v498_v12  ;;  %v499_v15 = vmul.f32 0.03125, %v486_v13  ;;  %v527_v24 = vsel %vm468_vm0, %v513_v5, 0.0  ;;  %v2074_v12 = vld [vmem:[%s2337_s5 + $0x28] sm:$0xff] }
 0x1a0   :  { %v514_v53 = vmul.f32 %v1975_v3, %v1975_v3  ;;  %v1982_v17 = vsub.f32 %v1893_v21, %v499_v15 }
 0x1a1   :  { %v2004_v31 = vpop.permute.xlu1 %589 }
 0x1a2   :  { %v530_v20 = vsel %vm468_vm0, %v514_v53, 0.0  ;;  %v515_v21 = vmul.f32 %v1982_v17, %v1982_v17 }
 0x1a3   :  { %522 = vadd.xlane.f32.xlu1 %v521_v18  ;;  %531 = vadd.xlane.f32.xlu0 %v530_v20  ;;  %v489_v19 = vpop.xlane.xlu0 %488 }
 0x1a4   :  { %v500_v22 = vmul.f32 0.03125, %v489_v19  ;;  %v533_v26 = vsel %vm468_vm0, %v515_v21, 0.0 }
 0x1a5   :  { %v2013_v35 = vpop.permute.xlu1 %631 }
 0x1a6   :  { %v1989_v23 = vsub.f32 %v1897_v34, %v500_v22  ;;  %v1469_v34 = vpack.c.bf16 %v1042_v33, %v1041_v32  ;;  %v801_v32 = vsel %vm797_vm1, %v1934_v49, 0.0 }
 0x1a7   :  { %528 = vadd.xlane.f32.xlu1 %v527_v24 }
 0x1a8   :  { %v516_v25 = vmul.f32 %v1989_v23, %v1989_v23  ;;  %1470 = vmatprep.subr.bf16.mxu1 %v1469_v34 }
 0x1a9   :  { %1472 = vmatpush3.bf16.msra.mxu1 %v1469_v34  ;;  %v2015_v36 = vpop.permute.xlu1 %635 }
 0x1aa   :  { %v536_v27 = vsel %vm468_vm0, %v516_v25, 0.0 }
 0x1ab   :  { %534 = vadd.xlane.f32.xlu1 %v533_v26  ;;  %537 = vadd.xlane.f32.xlu0 %v536_v27  ;;  %v585_v9 = vpop.permute.xlu0 %584 }
 0x1ae   :  { %v2017_v39 = vpop.permute.xlu1 %594 }
 0x1af   :  { %v2068_v11 = vpop.permute.xlu0 %609 }
 0x1b2   :  { %v2019_v40 = vpop.permute.xlu1 %599 }
 0x1b7   :  { %v2023_v43 = vpop.permute.xlu1 %639 }
 0x1bb   :  { %v2029_v54 = vpop.permute.xlu1 %643 }
 0x1c0   :  { %v2033_v59 = vpop.permute.xlu1 %604 }
 0x1c1   :  { %655 = vperm.xlu0 %1483, %v556_v57   ;;  %v813_v57 = vsel %vm797_vm1, %v1944_v56, 0.0 }
 0x1c5   :  { %1487 = vset.pattern.permute.xlu0 %v1586_v38  ;;  %v2037_v62 = vpop.permute.xlu1 %647 }
 0x1e0   :  { %799 = vadd.xlane.f32.xlu0 %v798_v42 }
 0x1e4   :  { %805 = vadd.xlane.f32.xlu0 %v804_v44  ;;  %v810_v44 = vsel %vm797_vm1, %v1938_v52, 0.0 }
 0x1e8   :  { %808 = vadd.xlane.f32.xlu0 %v807_v45  ;;  %v1023_v45 = vld [vmem:[%s2338_s6] sm:$0xff] }
 0x1ec   :  { %814 = vadd.xlane.f32.xlu0 %v813_v57 }
 0x1f0   :  { %820 = vadd.xlane.f32.xlu0 %v819_v60 }
 0x1f7   :  { %v492_v63 = vpop.xlane.xlu1 %491 }
 0x1f8   :  { %v501_v0 = vmul.f32 0.03125, %v492_v63 }
 0x1fa   :  { %v2040_v1 = vsub.f32 %v1901_v37, %v501_v0  ;;  %v2057_v37 = vld [vmem:[%s2337_s5 + $0x38] sm:$0xff] }
 0x1fb   :  { %v2079_v53 = vpop.permute.xlu1 %614 }
 0x1fc   :  { %v517_v2 = vmul.f32 %v2040_v1, %v2040_v1 }
 0x1fe   :  { %v539_v4 = vsel %vm468_vm0, %v517_v2, 0.0 }
 0x1ff   :  { %540 = vadd.xlane.f32.xlu1 %v539_v4  ;;  %v2081_v5 = vpop.permute.xlu1 %619 }
 0x206   :  { %918 = vperm.xlu0 %1487, %v2048_v7  }
 0x20a   :  { %1208 = vperm.xlu0 %1487, %v1194_v8  }
 0x20e   :  { %948 = vperm.xlu0 %1487, %v2057_v37  }
 0x210   :  { %659 = vperm.xlu1 %1485, %v1952_v58   ;;  %v2077_v58 = vpop.permute.xlu0 %651 }
 0x212   :  { %1494 = vset.pattern.permute.xlu0 %v1587_v41 }
 0x213   :  { %976 = vperm.xlu0 %1494, %v2064_v10  }
 0x214   :  { %1486 = vset.pattern.permute.xlu1 %v1586_v38 }
 0x217   :  { %980 = vperm.xlu0 %1494, %v2074_v12  }
 0x220   :  { %v520_v13 = vpop.xlane.xlu0 %519 }
 0x221   :  { %v542_v15 = vmul.f32 0.03125, %v520_v13 }
 0x223   :  { %v558_v16 = vadd.f32 1e-05, %v542_v15 }
 0x225   :  { %1530 = vrsqrt.f32 %v558_v16 }
 0x228   :  { %v526_v18 = vpop.xlane.xlu0 %525 }
 0x229   :  { %v544_v20 = vmul.f32 0.03125, %v526_v18  ;;  %v816_v18 = vsel %vm797_vm1, %v1936_v50, 0.0 }
 0x22b   :  { %v560_v19 = vadd.f32 1e-05, %v544_v20 }
 0x22d   :  { %1532 = vrsqrt.f32 %v560_v19 }
 0x22f   :  { %v1531_v22 = vpop.eup %1530 }
 0x230   :  { %v574_v24 = vmul.f32 %v1531_v22, %v1957_v61  ;;  %v523_v21 = vpop.xlane.xlu1 %522  ;;  %v532_v25 = vpop.xlane.xlu0 %531 }
 0x231   :  { %v543_v26 = vmul.f32 0.03125, %v523_v21  ;;  %v546_v27 = vmul.f32 0.03125, %v532_v25 }
 0x232   :  { %v622_v28 = vmul.f32 %v585_v9, %v574_v24 }
 0x233   :  { %v559_v29 = vadd.f32 1e-05, %v543_v26  ;;  %v562_v30 = vadd.f32 1e-05, %v546_v27 }
 0x234   :  { %802 = vadd.xlane.f32.xlu1 %v801_v32  ;;  %v529_v33 = vpop.xlane.xlu1 %528  ;;  %v662_v34 = vadd.f32 %v2013_v35, %v622_v28 }
 0x235   :  { %1534 = vrsqrt.f32 %v559_v29  ;;  %v545_v42 = vmul.f32 0.03125, %v529_v33 }
 0x236   :  { %1536 = vrsqrt.f32 %v562_v30  ;;  %vm670_vm2 = vcmp.ge.f32.partialorder %v662_v34, 0.0  ;;  %v678_v61 = vmul.f32 0.2, %v662_v34 }
 0x237   :  { %v1533_v57 = vpop.eup %1532  ;;  %v561_v60 = vadd.f32 1e-05, %v545_v42 }
 0x238   :  { %v576_v63 = vmul.f32 %v1533_v57, %v1963_v6  ;;  %811 = vadd.xlane.f32.xlu1 %v810_v44  ;;  %v535_v0 = vpop.xlane.xlu1 %534  ;;  %v538_v2 = vpop.xlane.xlu0 %537  ;;  %v686_v35 = vsel %vm670_vm2, %v662_v34, %v678_v61 }
 0x239   :  { %1538 = vrsqrt.f32 %v561_v60  ;;  %v547_v4 = vmul.f32 0.03125, %v535_v0  ;;  %v548_v8 = vmul.f32 0.03125, %v538_v2  ;;  %v1031_v9 = vmul.f32 %v1023_v45, %v686_v35  ;;  %v879_v45 = vld [vmem:[%s2337_s5] sm:$0xff] }
 0x23a   :  { %v624_v13 = vmul.f32 %v2017_v39, %v576_v63 }
 0x23b   :  { %v563_v15 = vadd.f32 1e-05, %v547_v4  ;;  %v564_v16 = vadd.f32 1e-05, %v548_v8  ;;  %1453 = vmatprep.mubr.msk.f32.mxu1 %vm468_vm0, %v1031_v9  ;;  %v881_v4 = vld [vmem:[%s2337_s5 + $0x10] sm:$0xff]  ;;  %v1028_v8 = vld [vmem:[%s2338_s6 + $0x28] sm:$0xff] }
 0x23c   :  { %817 = vadd.xlane.f32.xlu1 %v816_v18  ;;  %v664_v20 = vadd.f32 %v2023_v43, %v624_v13  ;;  %v1029_v9 = vld [vmem:[%s2338_s6 + $0x30] sm:$0xff] }
 0x23d   :  { %1540 = vrsqrt.f32 %v563_v15 }
 0x23e   :  { %1542 = vrsqrt.f32 %v564_v16  ;;  %v680_v26 = vmul.f32 0.2, %v664_v20  ;;  %vm672_vm3 = vcmp.ge.f32.partialorder %v664_v20, 0.0 }
 0x23f   :  { %v1535_v6 = vpop.eup %1534 }
 0x240   :  { %v1537_v19 = vpop.eup %1536  ;;  %v575_v22 = vmul.f32 %v1535_v6, %v1968_v51  ;;  %v1024_v51 = vld [vmem:[%s2338_s6 + $0x8] sm:$0xff]  ;;  %v656_v44 = vpop.permute.xlu0 %655  ;;  %v882_v6 = vld [vmem:[%s2337_s5 + $0x18] sm:$0xff] }
 0x241   :  { %v578_v24 = vmul.f32 %v1537_v19, %v1975_v3 }
 0x242   :  { %v623_v39 = vmul.f32 %v2004_v31, %v575_v22  ;;  %v688_v31 = vsel %vm672_vm3, %v664_v20, %v680_v26  ;;  %v1193_v22 = vld [vmem:[%s2339_s7] sm:$0xff]  ;;  %vm1271_vm3 = vcmask 8192  }
 0x243   :  { %v1539_v21 = vpop.eup %1538  ;;  %v626_v25 = vmul.f32 %v2033_v59, %v578_v24  ;;  %v1025_v59 = vld [vmem:[%s2338_s6 + $0x10] sm:$0xff] }
 0x244   :  { %v663_v27 = vadd.f32 %v2015_v36, %v623_v39  ;;  %v577_v28 = vmul.f32 %v1539_v21, %v1972_v14  ;;  %v1033_v61 = vmul.f32 %v1025_v59, %v688_v31 }
 0x245   :  { %v666_v29 = vadd.f32 %v2037_v62, %v626_v25 }
 0x246   :  { %v679_v30 = vmul.f32 0.2, %v663_v27  ;;  %v625_v43 = vmul.f32 %v2019_v40, %v577_v28  ;;  %vm671_vm4 = vcmp.ge.f32.partialorder %v663_v27, 0.0 }
 0x247   :  { %v1541_v3 = vpop.eup %1540  ;;  %v682_v36 = vmul.f32 0.2, %v666_v29  ;;  %vm674_vm5 = vcmp.ge.f32.partialorder %v666_v29, 0.0 }
 0x248   :  { %v1543_v32 = vpop.eup %1542  ;;  %v579_v14 = vmul.f32 %v1541_v3, %v1982_v17  ;;  %v687_v33 = vsel %vm671_vm4, %v663_v27, %v679_v30  ;;  %v665_v62 = vadd.f32 %v2029_v54, %v625_v43  ;;  %v1026_v17 = vld [vmem:[%s2338_s6 + $0x18] sm:$0xff]  ;;  %v885_v27 = vld [vmem:[%s2337_s5 + $0x30] sm:$0xff] }
 0x249   :  { %v1032_v40 = vmul.f32 %v1024_v51, %v687_v33  ;;  %v580_v34 = vmul.f32 %v1543_v32, %v1989_v23  ;;  %v690_v60 = vsel %vm674_vm5, %v666_v29, %v682_v36  ;;  %v1027_v23 = vld [vmem:[%s2338_s6 + $0x20] sm:$0xff] }
 0x24a   :  { %v627_v42 = vmul.f32 %v2068_v11, %v579_v14  ;;  %vm673_vm6 = vcmp.ge.f32.partialorder %v665_v62, 0.0  ;;  %v681_v57 = vmul.f32 0.2, %v665_v62  ;;  %v1035_v35 = vmul.f32 %v1027_v23, %v690_v60 }
 0x24b   :  { %1454 = vmatmul.mubr.msk.f32.vlgmr.msra.gmra.mrb[16].mxu1 %vm468_vm0, %v1032_v40  ;;  %v628_v54 = vmul.f32 %v2079_v53, %v580_v34 }
 0x24c   :  { %1456 = vmatprep.mubr.msk.f32.mxu1 %vm468_vm0, %v1033_v61  ;;  %v689_v11 = vsel %vm673_vm6, %v665_v62, %v681_v57  ;;  %v667_v63 = vadd.f32 %v2077_v58, %v627_v42 }
 0x24d   :  { %v668_v0 = vadd.f32 %v656_v44, %v628_v54  ;;  %913 = vperm.xlu1 %1486, %v879_v45   ;;  %v1034_v2 = vmul.f32 %v1026_v17, %v689_v11 }
 0x24e   :  { %vm675_vm7 = vcmp.ge.f32.partialorder %v667_v63, 0.0  ;;  %v683_v53 = vmul.f32 0.2, %v667_v63 }
 0x24f   :  { %vm676_vm8 = vcmp.ge.f32.partialorder %v668_v0, 0.0  ;;  %v684_v58 = vmul.f32 0.2, %v668_v0  ;;  %1457 = vmatmul.mubr.msk.f32.gmra.mrb[18].mxu1 %vm468_vm0, %v1034_v2 }
 0x250   :  { %1459 = vmatprep.mubr.msk.f32.mxu1 %vm468_vm0, %v1035_v35  ;;  %v691_v13 = vsel %vm675_vm7, %v667_v63, %v683_v53 }
 0x251   :  { %v692_v15 = vsel %vm676_vm8, %v668_v0, %v684_v58  ;;  %923 = vperm.xlu1 %1486, %v881_v4   ;;  %v1036_v16 = vmul.f32 %v1028_v8, %v691_v13  ;;  %v1198_v13 = vld [vmem:[%s2339_s7 + $0x28] sm:$0xff] }
 0x252   :  { %v1037_v18 = vmul.f32 %v1029_v9, %v692_v15  ;;  %v1199_v15 = vld [vmem:[%s2339_s7 + $0x30] sm:$0xff] }
 0x253   :  { %1460 = vmatmul.mubr.msk.f32.gmra.mrb[20].mxu1 %vm468_vm0, %v1036_v16 }
 0x254   :  { %1462 = vmatprep.mubr.msk.f32.mxu1 %vm468_vm0, %v1037_v18  ;;  %v1200_v18 = vld [vmem:[%s2339_s7 + $0x38] sm:$0xff] }
 0x255   :  { %1488 = vset.pattern.permute.xlu1 %v1587_v41 }
 0x256   :  { %960 = vperm.xlu1 %1488, %v879_v45  }
 0x25a   :  { %964 = vperm.xlu1 %1488, %v2048_v7  }
 0x25e   :  { %1489 = vset.pattern.permute.xlu1 %v1586_v38 }
 0x25f   :  { %928 = vperm.xlu1 %1489, %v882_v6  }
 0x263   :  { %1490 = vset.pattern.permute.xlu1 %v1587_v41 }
 0x264   :  { %968 = vperm.xlu1 %1490, %v881_v4  }
 0x268   :  { %1491 = vset.pattern.permute.xlu1 %v1586_v38 }
 0x269   :  { %933 = vperm.xlu1 %1491, %v2064_v10  }
 0x26d   :  { %1492 = vset.pattern.permute.xlu1 %v1587_v41  ;;  %v800_v20 = vpop.xlane.xlu0 %799 }
 0x26e   :  { %v823_v19 = vmul.f32 0.5, %v800_v20  ;;  %972 = vperm.xlu1 %1492, %v882_v6  }
 0x270   :  { %v2153_v7 = vsub.f32 %v1930_v47, %v823_v19  ;;  %v1195_v47 = vld [vmem:[%s2339_s7 + $0x10] sm:$0xff] }
 0x271   :  { %v806_v24 = vpop.xlane.xlu0 %805 }
 0x272   :  { %1493 = vset.pattern.permute.xlu1 %v1586_v38  ;;  %v825_v32 = vmul.f32 0.5, %v806_v24  ;;  %v839_v40 = vmul.f32 %v2153_v7, %v2153_v7 }
 0x273   :  { %1203 = vperm.xlu1 %1493, %v1193_v22  }
 0x274   :  { %v2187_v62 = vsub.f32 %v1928_v46, %v825_v32  ;;  %v847_v34 = vsel %vm797_vm1, %v839_v40, 0.0 }
 0x275   :  { %v809_v39 = vpop.xlane.xlu0 %808 }
 0x276   :  { %v826_v21 = vmul.f32 0.5, %v809_v39 }
 0x277   :  { %938 = vperm.xlu1 %1493, %v2074_v12   ;;  %v1197_v12 = vld [vmem:[%s2339_s7 + $0x20] sm:$0xff] }
 0x278   :  { %v2161_v10 = vsub.f32 %v1932_v48, %v826_v21  ;;  %v1196_v48 = vld [vmem:[%s2339_s7 + $0x18] sm:$0xff]  ;;  %s1588_s7 = smov [#allocation2]  }
 0x279   :  { %v815_v42 = vpop.xlane.xlu0 %814  ;;  %s1279_s2 = sshll.u32 %s1588_s7, 4  ;;  %s1280_s2 = int_to_ptr.vmem [resolvable:$true] %s1279_s2 }
 0x27a   :  { %v842_v25 = vmul.f32 %v2161_v10, %v2161_v10  ;;  %v828_v17 = vmul.f32 0.5, %v815_v42  ;;  %s1562_s20 = scalar_lea.vmem %s1280_s2, 16  ;;  %s1566_s21 = scalar_lea.vmem %s1280_s2, 32 }
 0x27b   :  { %1213 = vperm.xlu1 %1493, %v1195_v47   ;;  %p1563_p0 = scmp.ne.s32.totalorder %s1280_s2, %s1562_s20  ;;  %p1567_p1 = scmp.lt.s32.totalorder %s1280_s2, %s1280_s2 }
 0x27c   :  { %v856_v26 = vsel %vm797_vm1, %v842_v25, 0.0  ;;  %v2204_v11 = vsub.f32 %v1944_v56, %v828_v17  ;;  %p1568_p2 = scmp.lt.s32.totalorder %s1566_s21, %s1562_s20 }
 0x27d   :  { %857 = vadd.xlane.f32.xlu0 %v856_v26  ;;  %v821_v44 = vpop.xlane.xlu0 %820 }
 0x27e   :  { %v830_v61 = vmul.f32 0.5, %v821_v44  ;;  %v844_v56 = vmul.f32 %v2204_v11, %v2204_v11  ;;  %p1569_p3 = por %p1568_p2, %p1567_p1 }
 0x27f   :  { %943 = vperm.xlu1 %1493, %v885_v27  }
 0x280   :  { %v2196_v46 = vsub.f32 %v1942_v55, %v830_v61  ;;  %v862_v58 = vsel %vm797_vm1, %v844_v56, 0.0  ;;  %p1570_p4 = pnand %p1569_p3, %p1563_p0 }
 0x282   :  { %v846_v2 = vmul.f32 %v2196_v46, %v2196_v46 }
 0x283   :  { %1218 = vperm.xlu1 %1493, %v1196_v48  }
 0x284   :  { %v868_v53 = vsel %vm797_vm1, %v846_v2, 0.0 }
 0x287   :  { %1495 = vset.pattern.permute.xlu1 %v1587_v41  ;;  %v1030_v41 = vld [vmem:[%s2338_s6 + $0x38] sm:$0xff] }
 0x288   :  { %984 = vperm.xlu1 %1495, %v885_v27  }
 0x28c   :  { %1496 = vset.pattern.permute.xlu1 %v1586_v38  ;;  %v541_v28 = vpop.xlane.xlu1 %540 }
 0x28d   :  { %v549_v29 = vmul.f32 0.03125, %v541_v28  ;;  %1223 = vperm.xlu1 %1496, %v1197_v12  }
 0x28f   :  { %v565_v30 = vadd.f32 1e-05, %v549_v29 }
 0x290   :  { %v660_v31 = vpop.permute.xlu1 %659 }
 0x291   :  { %1544 = vrsqrt.f32 %v565_v30 }
 0x29b   :  { %v1545_v43 = vpop.eup %1544 }
 0x29c   :  { %v581_v51 = vmul.f32 %v1545_v43, %v2040_v1  ;;  %v841_v1 = vmul.f32 %v2187_v62, %v2187_v62 }
 0x29e   :  { %v629_v3 = vmul.f32 %v2081_v5, %v581_v51  ;;  %v853_v5 = vsel %vm797_vm1, %v841_v1, 0.0 }
 0x2a0   :  { %v669_v59 = vadd.f32 %v660_v31, %v629_v3 }
 0x2a2   :  { %vm677_vm9 = vcmp.ge.f32.partialorder %v669_v59, 0.0  ;;  %v685_v36 = vmul.f32 0.2, %v669_v59 }
 0x2a4   :  { %v693_v14 = vsel %vm677_vm9, %v669_v59, %v685_v36 }
 0x2a5   :  { %v1038_v33 = vmul.f32 %v1030_v41, %v693_v14  ;;  %v919_v41 = vpop.permute.xlu0 %918 }
 0x2a7   :  { %1463 = vmatmul.mubr.msk.f32.gmra.mrb[22].mxu1 %vm468_vm0, %v1038_v33 }
 0x2b1   :  { %854 = vadd.xlane.f32.xlu1 %v853_v5  ;;  %v2268_v5 = vpop.permute.xlu0 %1208 }
 0x2b5   :  { %848 = vadd.xlane.f32.xlu1 %v847_v34  ;;  %v2272_v34 = vpop.permute.xlu0 %948 }
 0x2b9   :  { %v2276_v44 = vpop.permute.xlu0 %976 }
 0x2c1   :  { %v803_v45 = vpop.xlane.xlu1 %802 }
 0x2c2   :  { %v824_v57 = vmul.f32 0.5, %v803_v45 }
 0x2c4   :  { %v2199_v54 = vsub.f32 %v1934_v49, %v824_v57  ;;  %v2280_v57 = vpop.permute.xlu0 %980 }
 0x2c5   :  { %v812_v60 = vpop.xlane.xlu1 %811 }
 0x2c6   :  { %v840_v23 = vmul.f32 %v2199_v54, %v2199_v54  ;;  %v827_v63 = vmul.f32 0.5, %v812_v60 }
 0x2c8   :  { %v850_v0 = vsel %vm797_vm1, %v840_v23, 0.0  ;;  %v2210_v4 = vsub.f32 %v1938_v52, %v827_v63 }
 0x2c9   :  { %v818_v35 = vpop.xlane.xlu1 %817  ;;  %851 = vadd.xlane.f32.xlu0 %v850_v0 }
 0x2ca   :  { %v829_v55 = vmul.f32 0.5, %v818_v35  ;;  %v843_v52 = vmul.f32 %v2210_v4, %v2210_v4 }
 0x2cc   :  { %v2213_v49 = vsub.f32 %v1936_v50, %v829_v55  ;;  %v859_v50 = vsel %vm797_vm1, %v843_v52, 0.0 }
 0x2cd   :  { %869 = vadd.xlane.f32.xlu0 %v868_v53  ;;  %v2232_v16 = vpop.permute.xlu1 %913 }
 0x2ce   :  { %v845_v8 = vmul.f32 %v2213_v49, %v2213_v49 }
 0x2d0   :  { %v865_v9 = vsel %vm797_vm1, %v845_v8, 0.0 }
 0x2d1   :  { %866 = vadd.xlane.f32.xlu1 %v865_v9  ;;  %863 = vadd.xlane.f32.xlu0 %v862_v58  ;;  %v2238_v6 = vpop.permute.xlu1 %923 }
 0x2d5   :  { %860 = vadd.xlane.f32.xlu1 %v859_v50  ;;  %v2240_v20 = vpop.permute.xlu1 %960 }
 0x2d9   :  { %v2242_v19 = vpop.permute.xlu1 %964 }
 0x2e6   :  { %1228 = vperm.xlu1 %1496, %v1198_v13  }
 0x2e7   :  { %988 = vperm.xlu0 %1494, %v2057_v37   ;;  %v2244_v37 = vpop.permute.xlu1 %928 }
 0x2ea   :  { %1233 = vperm.xlu1 %1496, %v1199_v15  }
 0x2eb   :  { %1497 = vset.pattern.permute.xlu0 %v1586_v38  ;;  %v2246_v22 = vpop.permute.xlu1 %968 }
 0x2ec   :  { %1238 = vperm.xlu0 %1497, %v1200_v18  }
 0x2ef   :  { %v2248_v24 = vpop.permute.xlu1 %933 }
 0x2f3   :  { %v2250_v39 = vpop.permute.xlu1 %972 }
 0x2f7   :  { %v2252_v21 = vpop.permute.xlu1 %1203 }
 0x2fb   :  { %v2254_v47 = vpop.permute.xlu1 %938 }
 0x2ff   :  { %v2258_v29 = vpop.permute.xlu1 %1213 }
 0x303   :  { %v2263_v14 = vpop.permute.xlu1 %943 }
 0x307   :  { %v2270_v40 = vpop.permute.xlu1 %1218 }
 0x30a   :  { %v858_v23 = vpop.xlane.xlu0 %857 }
 0x30b   :  { %v2274_v42 = vpop.permute.xlu1 %984  ;;  %v874_v0 = vmul.f32 0.5, %v858_v23 }
 0x30d   :  { %v890_v55 = vadd.f32 1e-05, %v874_v0 }
 0x30f   :  { %v2278_v61 = vpop.permute.xlu1 %1223 }
 0x31e   :  { %v1455_v38 = vpop.f32.mrb[16].mxu1 }
 0x31f   :  { %v1173_v25 = vsel %vm797_vm1, %v1455_v38, 0.0  ;;  %v1133_v26 = vpop.f32.mrb[17].mxu1 }
 0x320   :  { %v1172_v27 = vsel %vm797_vm1, %v1133_v26, 0.0 }
 0x321   :  { %v1174_v48 = vadd.f32 %v1173_v25, %v1172_v27 }
 0x322   :  { %v1458_v12 = vpop.f32.mrb[18].mxu1 }
 0x323   :  { %v1143_v28 = vpop.f32.mrb[19].mxu1  ;;  %v1177_v51 = vsel %vm797_vm1, %v1458_v12, 0.0 }
 0x324   :  { %v1175_v30 = vsel %vm797_vm1, %v1143_v28, 0.0 }
 0x325   :  { %v1176_v43 = vadd.f32 %v1175_v30, %v1174_v48 }
 0x326   :  { %v1461_v3 = vpop.f32.mrb[20].mxu1 }
 0x327   :  { %v1153_v31 = vpop.f32.mrb[21].mxu1  ;;  %v1178_v59 = vadd.f32 %v1177_v51, %v1176_v43  ;;  %v1181_v33 = vsel %vm797_vm1, %v1461_v3, 0.0 }
 0x328   :  { %v1179_v36 = vsel %vm797_vm1, %v1153_v31, 0.0 }
 0x329   :  { %v1180_v32 = vadd.f32 %v1179_v36, %v1178_v59 }
 0x32b   :  { %v2266_v1 = vadd.f32 %v1181_v33, %v1180_v32 }
 0x33e   :  { %v855_v45 = vpop.xlane.xlu1 %854 }
 0x33f   :  { %v873_v63 = vmul.f32 0.5, %v855_v45 }
 0x341   :  { %v889_v35 = vadd.f32 1e-05, %v873_v63 }
 0x342   :  { %v849_v17 = vpop.xlane.xlu1 %848 }
 0x343   :  { %v871_v60 = vmul.f32 0.5, %v849_v17 }
 0x345   :  { %v887_v2 = vadd.f32 1e-05, %v871_v60 }
 0x347   :  { %1546 = vrsqrt.f32 %v887_v2 }
 0x348   :  { %1548 = vrsqrt.f32 %v889_v35 }
 0x349   :  { %1550 = vrsqrt.f32 %v890_v55 }
 0x351   :  { %v1547_v56 = vpop.eup %1546 }
 0x352   :  { %v1549_v9 = vpop.eup %1548  ;;  %v903_v52 = vmul.f32 %v1547_v56, %v2153_v7 }
 0x353   :  { %v1551_v13 = vpop.eup %1550  ;;  %v905_v18 = vmul.f32 %v1549_v9, %v2187_v62 }
 0x354   :  { %v906_v25 = vmul.f32 %v1551_v13, %v2161_v10  ;;  %v951_v26 = vmul.f32 %v2232_v16, %v903_v52 }
 0x355   :  { %v953_v30 = vmul.f32 %v2238_v6, %v905_v18 }
 0x356   :  { %v852_v53 = vpop.xlane.xlu0 %851  ;;  %v954_v51 = vmul.f32 %v2244_v37, %v906_v25  ;;  %v991_v3 = vadd.f32 %v2240_v20, %v951_v26 }
 0x357   :  { %v872_v8 = vmul.f32 0.5, %v852_v53  ;;  %v993_v10 = vadd.f32 %v2246_v22, %v953_v30 }
 0x358   :  { %v1007_v32 = vmul.f32 0.2, %v991_v3  ;;  %v994_v33 = vadd.f32 %v2250_v39, %v954_v51  ;;  %vm999_vm10 = vcmp.ge.f32.partialorder %v991_v3, 0.0 }
 0x359   :  { %v888_v58 = vadd.f32 1e-05, %v872_v8  ;;  %v1009_v45 = vmul.f32 0.2, %v993_v10  ;;  %vm1001_vm11 = vcmp.ge.f32.partialorder %v993_v10, 0.0 }
 0x35a   :  { %v870_v50 = vpop.xlane.xlu0 %869  ;;  %v1015_v17 = vsel %vm999_vm10, %v991_v3, %v1007_v32  ;;  %v1010_v60 = vmul.f32 0.2, %v994_v33  ;;  %vm1002_vm12 = vcmp.ge.f32.partialorder %v994_v33, 0.0 }
 0x35b   :  { %1552 = vrsqrt.f32 %v888_v58  ;;  %v878_v15 = vmul.f32 0.5, %v870_v50  ;;  %v1017_v22 = vsel %vm1001_vm11, %v993_v10, %v1009_v45  ;;  %v1241_v0 = vmul.f32 %v2252_v21, %v1015_v17 }
 0x35c   :  { %v1018_v35 = vsel %vm1002_vm12, %v994_v33, %v1010_v60  ;;  %v1243_v55 = vmul.f32 %v2258_v29, %v1017_v22 }
 0x35d   :  { %v894_v38 = vadd.f32 1e-05, %v878_v15  ;;  %v1244_v58 = vmul.f32 %v2270_v40, %v1018_v35 }
 0x35e   :  { %v867_v27 = vpop.xlane.xlu1 %866  ;;  %v864_v48 = vpop.xlane.xlu0 %863 }
 0x35f   :  { %1554 = vrsqrt.f32 %v894_v38  ;;  %v877_v12 = vmul.f32 0.5, %v867_v27  ;;  %v876_v28 = vmul.f32 0.5, %v864_v48  ;;  %v1254_v40 = vsel %vm797_vm1, %v1244_v58, 0.0 }
 0x361   :  { %v893_v43 = vadd.f32 1e-05, %v877_v12  ;;  %v892_v7 = vadd.f32 1e-05, %v876_v28 }
 0x362   :  { %v861_v31 = vpop.xlane.xlu1 %860 }
 0x363   :  { %1556 = vrsqrt.f32 %v893_v43  ;;  %v875_v62 = vmul.f32 0.5, %v861_v31 }
 0x364   :  { %1558 = vrsqrt.f32 %v892_v7 }
 0x365   :  { %v1553_v16 = vpop.eup %1552  ;;  %v891_v59 = vadd.f32 1e-05, %v875_v62 }
 0x366   :  { %v904_v36 = vmul.f32 %v1553_v16, %v2199_v54  ;;  %v989_v50 = vpop.permute.xlu0 %988  ;;  %v1229_v18 = vpop.permute.xlu1 %1228 }
 0x367   :  { %1560 = vrsqrt.f32 %v891_v59 }
 0x368   :  { %v952_v6 = vmul.f32 %v919_v41, %v904_v36 }
 0x369   :  { %v1555_v37 = vpop.eup %1554 }
 0x36a   :  { %v992_v20 = vadd.f32 %v2242_v19, %v952_v6  ;;  %v910_v63 = vmul.f32 %v1555_v37, %v2196_v46  ;;  %v1249_v46 = vsel %vm797_vm1, %v1241_v0, 0.0  ;;  %v1234_v43 = vpop.permute.xlu1 %1233 }
 0x36b   :  { %v1239_v51 = vpop.permute.xlu0 %1238 }
 0x36c   :  { %vm1000_vm13 = vcmp.ge.f32.partialorder %v992_v20, 0.0  ;;  %v1008_v23 = vmul.f32 0.2, %v992_v20  ;;  %v958_v56 = vmul.f32 %v2272_v34, %v910_v63 }
 0x36d   :  { %v1557_v54 = vpop.eup %1556 }
 0x36e   :  { %v1559_v39 = vpop.eup %1558  ;;  %v1016_v2 = vsel %vm1000_vm13, %v992_v20, %v1008_v23  ;;  %v909_v41 = vmul.f32 %v1557_v54, %v2213_v49  ;;  %v998_v15 = vadd.f32 %v989_v50, %v958_v56 }
 0x36f   :  { %v908_v19 = vmul.f32 %v1559_v39, %v2204_v11  ;;  %v1242_v53 = vmul.f32 %v2268_v5, %v1016_v2  ;;  %v1252_v5 = vsel %vm797_vm1, %v1243_v55, 0.0 }
 0x370   :  { %v957_v8 = vmul.f32 %v2263_v14, %v909_v41  ;;  %v1014_v27 = vmul.f32 0.2, %v998_v15  ;;  %vm1006_vm2 = vcmp.ge.f32.partialorder %v998_v15, 0.0 }
 0x371   :  { %v1561_v9 = vpop.eup %1560  ;;  %v956_v21 = vmul.f32 %v2254_v47, %v908_v19  ;;  %v1250_v52 = vsel %vm797_vm1, %v1242_v53, 0.0 }
 0x372   :  { %v907_v49 = vmul.f32 %v1561_v9, %v2210_v4  ;;  %v1251_v29 = vadd.f32 %v1250_v52, %v1249_v46  ;;  %v997_v11 = vadd.f32 %v2274_v42, %v957_v8  ;;  %v1022_v7 = vsel %vm1006_vm2, %v998_v15, %v1014_v27 }
 0x373   :  { %v996_v34 = vadd.f32 %v2280_v57, %v956_v21  ;;  %v1248_v36 = vmul.f32 %v1239_v51, %v1022_v7 }
 0x374   :  { %v955_v14 = vmul.f32 %v2248_v24, %v907_v49  ;;  %v1253_v13 = vadd.f32 %v1252_v5, %v1251_v29  ;;  %v1013_v25 = vmul.f32 0.2, %v997_v11  ;;  %vm1005_vm15 = vcmp.ge.f32.partialorder %v997_v11, 0.0 }
 0x375   :  { %vm1004_vm14 = vcmp.ge.f32.partialorder %v996_v34, 0.0  ;;  %v1012_v47 = vmul.f32 0.2, %v996_v34  ;;  %v1262_v37 = vsel %vm797_vm1, %v1248_v36, 0.0 }
 0x376   :  { %v995_v38 = vadd.f32 %v2276_v44, %v955_v14  ;;  %v1255_v4 = vadd.f32 %v1254_v40, %v1253_v13  ;;  %v1021_v48 = vsel %vm1005_vm15, %v997_v11, %v1013_v25 }
 0x377   :  { %v1020_v26 = vsel %vm1004_vm14, %v996_v34, %v1012_v47  ;;  %v1247_v31 = vmul.f32 %v1234_v43, %v1021_v48 }
 0x378   :  { %vm1003_vm0 = vcmp.ge.f32.partialorder %v995_v38, 0.0  ;;  %v1011_v42 = vmul.f32 0.2, %v995_v38  ;;  %v1246_v28 = vmul.f32 %v1229_v18, %v1020_v26 }
 0x379   :  { %v1260_v33 = vsel %vm797_vm1, %v1247_v31, 0.0 }
 0x37a   :  { %v1019_v57 = vsel %vm1003_vm0, %v995_v38, %v1011_v42  ;;  %v1464_v24 = vpop.f32.mrb[22].mxu1  ;;  %v1258_v59 = vsel %vm797_vm1, %v1246_v28, 0.0 }
 0x37b   :  { %v1245_v12 = vmul.f32 %v2278_v61, %v1019_v57  ;;  %v1163_v30 = vpop.f32.mrb[23].mxu1  ;;  %v1185_v16 = vsel %vm797_vm1, %v1464_v24, 0.0 }
 0x37c   :  { %v1183_v44 = vsel %vm797_vm1, %v1163_v30, 0.0 }
 0x37d   :  { %v1256_v3 = vsel %vm797_vm1, %v1245_v12, 0.0  ;;  %v1184_v62 = vadd.f32 %v1183_v44, %v2266_v1 }
 0x37e   :  { %v1257_v10 = vadd.f32 %v1256_v3, %v1255_v4 }
 0x37f   :  { %v1186_v32 = vadd.f32 %v1185_v16, %v1184_v62 }
 0x380   :  { %v1259_v61 = vadd.f32 %v1258_v59, %v1257_v10 }
 0x381   :  { %v1187_v6 = vrot.slane %v1186_v32, 4 }
 0x382   :  { %v1261_v45 = vadd.f32 %v1260_v33, %v1259_v61 }
 0x383   :  { %v1188_v20 = vadd.f32 %v1187_v6, %v1186_v32 }
 0x384   :  { %v1263_v17 = vadd.f32 %v1262_v37, %v1261_v45 }
 0x385   :  { %v1189_v60 = vrot.slane %v1188_v20, 2 }
 0x386   :  { %v1264_v22 = vrot.slane %v1263_v17, 4 }
 0x387   :  { %v1190_v1 = vadd.f32 %v1189_v60, %v1188_v20 }
 0x388   :  { %v1265_v23 = vadd.f32 %v1264_v22, %v1263_v17 }
 0x389   :  { %v1191_v0 = vrot.slane %v1190_v1, 1 }
 0x38a   :  { %v1266_v63 = vrot.slane %v1265_v23, 2 }
 0x38b   :  { %v1192_v2 = vadd.f32 %v1191_v0, %v1190_v1 }
 0x38c   :  { %v1267_v54 = vadd.f32 %v1266_v63, %v1265_v23 }
 0x38e   :  { %v1268_v39 = vrot.slane %v1267_v54, 1 }
 0x390   :  { %v1269_v35 = vadd.f32 %v1268_v39, %v1267_v54 }
 0x392   :  { %v1270_v41 = vadd.f32 %v1269_v35, %v1192_v2 }
 0x394   :  { %1272 = vst.msk [vmem:[#allocation2] sm:$0x1] %vm1271_vm3, %v1270_v41 }
 0x395   :  { %1573 = shalt.err (!%p1570_p4)
}
 0x396   :  { %s1574_s24 = scalar_lea.hbm %s2341_s9, 16 }
 0x397   :  { %p1575_p5 = scmp.ne.s32.totalorder %s2341_s9, %s1574_s24  ;;  %p1578_p6 = scmp.lt.u32.totalorder %s1574_s24, %s2341_s9 }
 0x399   :  { %p1580_p7 = pnand %p1578_p6, %p1575_p5 }
 0x39b   :  { %1583 = shalt.err (!%p1580_p7)
}
 0x39c   :  { %1282 = dma.vmem_to_hbm [thread:$0]  %s1280_s2, 16, %s2341_s9, [#allocation3]  }
 0x39d   :  { %1584 = dma.done.wait [#allocation3], 16  }
 0x39e   :  { %1585 = vsyncadd [#allocation3], 4294967280 }
 0x39f   :  { %1286 = vsyncpa [#allocation3], 1 }

</bundles_post_ra>
